<compile_context>
chip_gen: v6e
topology: v6e:2x2x1
jax: 0.10.0
libtpu: 0.0.40
codegen_flags: <defaults>
</compile_context>

<pallas_src>
import functools

import jax
import jax.numpy as jnp
from jax.experimental import pallas as pl
from jax.experimental.pallas import tpu as pltpu


# ---------------------------------------------------------------------------
# Fused forward kernel
# ---------------------------------------------------------------------------

def _fused_forward_kernel(
    # row-tiled A (int8 or bf16) and resident M = [X | T | 1] (bf16)
    a_ref, m_ref,
    # GCN encoder
    w_gc_ref, b_gc_ref,
    # X_XN predictor (layer1 split into emb-part / X-part)
    w1e_ref, w1x_ref, b1_ref, w2_ref, b2_ref, w3_ref, b3_ref,
    # g_T discriminator
    wg1_ref, bg1_ref, wg2_ref, bg2_ref,
    # g_Z density head
    wz_ref, bz_ref,
    # fused Q1/Q0 stack (layer1 split into emb-part / navgT-part)
    wq1e_ref, wq1t_ref, bq1_ref, wq2_ref, bq2_ref, wq3_ref, bq3_ref,
    # TR spline weights, columns = [t1, t0], shape (d, 2)
    wtr_ref,
    # optional row-tiled Z, then the single packed output
    *rest,
    xshape, num_grid, degree, knots, use_z, tile_m):
    f32 = jnp.float32
    if use_z:
        z_ref, out_ref = rest
    else:
        (out_ref,) = rest

    def mm(a, w_ref):
        # MXU matmul: operands in the weight dtype (bf16), f32 accumulation.
        return jnp.dot(a.astype(w_ref.dtype), w_ref[...],
                       preferred_element_type=f32)

    # ---- GCN encoder + neighbor stats: one MXU pass over the A row strip ---
    # A arrives as int8 (binary adjacency) and is cast to bf16 here; the cast
    # is VPU filler hidden under the (dominant) A DMA.
    a_bf = a_ref[...].astype(m_ref.dtype)
    am = jnp.dot(a_bf, m_ref[...], preferred_element_type=f32)
    ax = am[:, :xshape]                          # A @ X
    at = am[:, xshape:xshape + 1]                # A @ T
    deg = am[:, xshape + 1:xshape + 2]           # row degree

    # relu(A @ (X W) + b) == relu((A X) W + b)
    emb0 = jnp.maximum(mm(ax, w_gc_ref) + b_gc_ref[...], 0.0)

    # X / T row tiles reused from the already-resident M (no extra DMAs).
    row0 = pl.multiple_of(pl.program_id(0) * tile_m, tile_m)
    m_rows = m_ref[pl.ds(row0, tile_m), :]
    x_rows = m_rows[:, :xshape]                  # bf16 X rows (MXU operand)
    t = m_rows[:, xshape:xshape + 1].astype(f32)  # 0/1, exact in bf16

    if use_z:
        navg = z_ref[...]
    else:
        # Exact divide (VPU filler); guard isolated nodes (reference -> NaN).
        navg = at / jnp.maximum(deg, 1e-12)

    # ---- X_XN predictor (Linear-ReLU, Linear-ReLU, Linear); concat removed -
    h = jnp.maximum(mm(emb0, w1e_ref) + mm(x_rows, w1x_ref) + b1_ref[...], 0.0)
    h = jnp.maximum(mm(h, w2_ref) + b2_ref[...], 0.0)
    emb = mm(h, w3_ref) + b3_ref[...]                        # (TM, h2)

    # ---- g_T : Linear-ReLU, Linear-Sigmoid (numerically stable) ------------
    g = jnp.maximum(mm(emb, wg1_ref) + bg1_ref[...], 0.0)
    y = mm(g, wg2_ref) + bg2_ref[...]
    ez = jnp.exp(-jnp.abs(y))
    inv = pl.reciprocal(1.0 + ez, approx=True)
    g_t = jnp.where(y >= 0.0, inv, ez * inv)

    # ---- g_Z : softmax over grid points + linear interpolation at navg -----
    logits = mm(emb, wz_ref) + bz_ref[...]                   # (TM, G+1)
    mx = jnp.max(logits, axis=1, keepdims=True)
    ex = jnp.exp(logits - mx)
    p = ex * pl.reciprocal(jnp.sum(ex, axis=1, keepdims=True), approx=True)
    zg = navg * float(num_grid)
    lo = jnp.clip(jnp.floor(zg), 0.0, float(num_grid - 1))
    frac = zg - lo
    lo_i = lo.astype(jnp.int32)
    cols = jax.lax.broadcasted_iota(jnp.int32, p.shape, 1)
    wsel = (jnp.where(cols == lo_i, 1.0 - frac, 0.0)
            + jnp.where(cols == lo_i + 1, frac, 0.0))
    g_z = jnp.sum(p * wsel, axis=1, keepdims=True)           # (TM, 1)

    # ---- fused Q1/Q0 stack (block-diag weights) + T-mix ---------------------
    hq = jnp.maximum(mm(emb, wq1e_ref) + navg * wq1t_ref[...]
                     + bq1_ref[...], 0.0)                    # (TM, 4*hidden)
    hq = jnp.maximum(mm(hq, wq2_ref) + bq2_ref[...], 0.0)    # (TM, 2*hidden)
    qq = mm(hq, wq3_ref) + bq3_ref[...]                      # (TM, 2)=[q1,q0]
    q_hat = t * qq[:, 0:1] + (1.0 - t) * qq[:, 1:2]

    # ---- targeted regularizer: Horner eval, no basis matrix / MXU dispatch -
    # eps_pair[:, s] = sum_k z^k * w[k,s] + sum_j relu(z - knot_j)^degree * w[.,s]
    acc = jnp.zeros((tile_m, 2), f32) + wtr_ref[degree:degree + 1, :]
    for k in range(degree - 1, -1, -1):
        acc = acc * navg + wtr_ref[k:k + 1, :]
    for j, knot in enumerate(knots):
        r = jnp.maximum(navg - knot, 0.0)
        rk = r
        for _ in range(degree - 1):
            rk = rk * r
        acc = acc + rk * wtr_ref[degree + 1 + j:degree + 2 + j, :]
    eps = jnp.where(t == 1.0, acc[:, 0:1], acc[:, 1:2])

    # ---- single lane-packed output slab: [emb | g_T g_Z Q eps navg pad] -----
    pcols = jax.lax.broadcasted_iota(jnp.int32, (tile_m, 8), 1)
    pack = (jnp.where(pcols == 0, g_t, 0.0)
            + jnp.where(pcols == 1, g_z, 0.0)
            + jnp.where(pcols == 2, q_hat, 0.0)
            + jnp.where(pcols == 3, eps, 0.0)
            + jnp.where(pcols == 4, navg, 0.0))
    out_ref[...] = jnp.concatenate([emb, pack], axis=1).astype(out_ref.dtype)


# ---------------------------------------------------------------------------
# Parameter init (torch.nn.Linear-style)
# ---------------------------------------------------------------------------

def _linear_init(key, fan_in, fan_out):
    kw, kb = jax.random.split(key)
    scale = 1.0 / jnp.sqrt(float(fan_in))
    w = jax.random.uniform(kw, (fan_in, fan_out), jnp.float32, -scale, scale)
    b = jax.random.uniform(kb, (fan_out,), jnp.float32, -scale, scale)
    return w, b


def init_params(key, xshape, hidden, num_grid, tr_num_knots, tr_degree):
    ks = jax.random.split(key, 16)
    h2 = hidden // 2
    d = tr_degree + 1 + tr_num_knots
    return {
        "gcn": _linear_init(ks[0], xshape, hidden),
        "xxn": [_linear_init(ks[1], hidden + xshape, hidden),
                _linear_init(ks[2], hidden, hidden),
                _linear_init(ks[3], hidden, h2)],
        "gt": [_linear_init(ks[4], h2, hidden),
               _linear_init(ks[5], hidden, 1)],
        "gz": _linear_init(ks[6], h2, num_grid + 1),
        "q1": [_linear_init(ks[7], h2 + 1, hidden * 2),
               _linear_init(ks[8], hidden * 2, hidden),
               _linear_init(ks[9], hidden, 1)],
        "q0": [_linear_init(ks[10], h2 + 1, hidden * 2),
               _linear_init(ks[11], hidden * 2, hidden),
               _linear_init(ks[12], hidden, 1)],
        # torch.rand-style init for the TR spline weights (init_weight=True
        # would zero them -> epsilon == 0; random kept so the path computes).
        "tr1": jax.random.uniform(ks[13], (d,), jnp.float32),
        "tr0": jax.random.uniform(ks[14], (d,), jnp.float32),
    }


# ---------------------------------------------------------------------------
# Wrapper helpers
# ---------------------------------------------------------------------------

def _block_diag(a, b):
    ra, ca = a.shape
    rb, cb = b.shape
    top = jnp.concatenate([a, jnp.zeros((ra, cb), a.dtype)], axis=1)
    bot = jnp.concatenate([jnp.zeros((rb, ca), b.dtype), b], axis=1)
    return jnp.concatenate([top, bot], axis=0)


def _vmem_cap_bytes():
    """Usable VMEM budget (85% of physical; conservative fallback covers v7x)."""
    try:
        info = pltpu.get_tpu_info()
        cap = getattr(info, "vmem_capacity_bytes", None)
        if cap:
            return int(cap * 0.85)
    except Exception:
        pass
    return 48 * 1024 * 1024   # fits inside v7x's 64 MiB / TensorCore


def _pick_tile_m(n, a_itemsize, a_budget_bytes):
    """Largest divisor of n that is a multiple of the sublane pack (32 for
    int8, 8 otherwise), is <= n//2 (grid >= 2 so both v7x TCs get work), and
    whose double-buffered A strip fits the budget."""
    mult = 32 if a_itemsize == 1 else 8
    best = None
    d = mult
    while d <= max(mult, n // 2):
        if n % d == 0 and 2 * d * n * a_itemsize <= a_budget_bytes:
            best = d
        d += mult
    return best if best is not None else n   # full-dims block is always legal


# ---------------------------------------------------------------------------
# Forward wrapper
# ---------------------------------------------------------------------------

def targeted_model_forward(params, A, X, T, Z=None, *, num_grid=20,
                           tr_knots=(0.25, 0.5, 0.75), tr_degree=2,
                           tile_m=None, mm_dtype=jnp.bfloat16,
                           assume_binary_A=True):
    f32 = jnp.float32
    N, xshape = X.shape
    hidden = params["gcn"][0].shape[1]
    h2 = hidden // 2
    out_w = h2 + 8
    use_z = Z is not None

    # A dominates HBM traffic (N^2 vs N*hidden for everything else).  Store it
    # as int8 when it is a 0/1 adjacency (exact) and cast to bf16 in-kernel.
    if jnp.issubdtype(A.dtype, jnp.integer) or assume_binary_A:
        A_store = A.astype(jnp.int8)
    else:
        A_store = A.astype(mm_dtype)
    a_itemsize = jnp.dtype(A_store.dtype).itemsize

    cap = _vmem_cap_bytes()
    if tile_m is None:
        tile_m = _pick_tile_m(N, a_itemsize, cap // 2)
    mult = 32 if a_itemsize == 1 else 8
    assert N % tile_m == 0, "tile_m must divide N"
    assert tile_m == N or tile_m % mult == 0, \
        f"tile_m must be a multiple of {mult} (or equal N)"
    grid = (N // tile_m,)

    # ---- one-time parameter packing (glue; removes hot-path concats) -------
    T_col = T.reshape(-1, 1).astype(f32)
    M = jnp.concatenate([X.astype(f32), T_col, jnp.ones((N, 1), f32)],
                        axis=1).astype(mm_dtype)            # [X | T | 1]
    Zc = Z.reshape(-1, 1).astype(f32) if use_z else None

    w_gc, b_gc = params["gcn"]
    (w1, b1), (w2, b2), (w3, b3) = params["xxn"]
    (wg1, bg1), (wg2, bg2) = params["gt"]
    wz, bz = params["gz"]
    (wq1_1, bq1_1), (wq1_2, bq1_2), (wq1_3, bq1_3) = params["q1"]
    (wq0_1, bq0_1), (wq0_2, bq0_2), (wq0_3, bq0_3) = params["q0"]

    w1e, w1x = w1[:hidden], w1[hidden:]                  # split concat(emb, X)
    wq1 = jnp.concatenate([wq1_1, wq0_1], axis=1)
    wq1e, wq1t = wq1[:h2], wq1[h2:h2 + 1]                # split concat(emb, t)
    bq1f = jnp.concatenate([bq1_1, bq0_1])
    wq2f = _block_diag(wq1_2, wq0_2)
    bq2f = jnp.concatenate([bq1_2, bq0_2])
    wq3f = _block_diag(wq1_3, wq0_3)
    bq3f = jnp.concatenate([bq1_3, bq0_3])
    wtr = jnp.stack([params["tr1"], params["tr0"]], axis=1)   # (d, 2)

    def mmc(w):
        return w.astype(mm_dtype)

    def bias(b):
        return b.reshape(1, -1).astype(f32)

    weights = [
        mmc(w_gc), bias(b_gc),
        mmc(w1e), mmc(w1x), bias(b1), mmc(w2), bias(b2), mmc(w3), bias(b3),
        mmc(wg1), bias(bg1), mmc(wg2), bias(bg2),
        mmc(wz), bias(bz),
        mmc(wq1e), wq1t.reshape(1, -1).astype(f32), bias(bq1f),
        mmc(wq2f), bias(bq2f), mmc(wq3f), bias(bq3f),
        wtr.astype(f32),
    ]
    inputs = [A_store, M] + weights + ([Zc] if use_z else [])

    def full_spec(arr):
        return pl.BlockSpec(arr.shape, lambda i: (0, 0))

    in_specs = ([pl.BlockSpec((tile_m, N), lambda i: (i, 0)),   # A row strip
                 full_spec(M)]                                  # resident M
                + [full_spec(w) for w in weights]
                + ([pl.BlockSpec((tile_m, 1), lambda i: (i, 0))]
                   if use_z else []))

    out_shape = jax.ShapeDtypeStruct((N, out_w), f32)
    out_specs = pl.BlockSpec((tile_m, out_w), lambda i: (i, 0))

    # ---- VMEM budget derived from the actual tiles (not hard-coded) --------
    def nbytes(a):
        return int(a.size) * jnp.dtype(a.dtype).itemsize
    est = (2 * tile_m * N * a_itemsize                 # double-buffered A strip
           + 2 * nbytes(M)                             # resident [X|T|1]
           + 2 * sum(nbytes(w) for w in weights)       # resident weights
           + (2 * tile_m * 4 if use_z else 0)
           + 2 * tile_m * out_w * 4                    # double-buffered output
           + tile_m * (2 * N + 4096)                   # bf16 A copy + f32 work
           + (2 << 20))                                # slack
    vmem_limit = int(min(cap, max(est, 16 << 20)))

    kernel = functools.partial(
        _fused_forward_kernel, xshape=xshape, num_grid=num_grid,
        degree=tr_degree, knots=tuple(float(k) for k in tr_knots),
        use_z=use_z, tile_m=tile_m)

    out = pl.pallas_call(
        kernel,
        grid=grid,
        in_specs=in_specs,
        out_specs=out_specs,
        out_shape=out_shape,
        compiler_params=pltpu.CompilerParams(
            dimension_semantics=("parallel",),      # row tiles split across TCs
            vmem_limit_bytes=vmem_limit),
    )(*inputs)

    embeddings = out[:, :h2]
    g_T_hat = out[:, h2:h2 + 1]
    g_Z_hat = out[:, h2 + 1:h2 + 2]
    Q_hat = out[:, h2 + 2:h2 + 3]
    epsilon = out[:, h2 + 3]
    navgT = out[:, h2 + 4]
    return g_T_hat, g_Z_hat, Q_hat, epsilon, embeddings, navgT


# ---------------------------------------------------------------------------
# Main
# ---------------------------------------------------------------------------

if __name__ == "__main__":
    N, Xshape, hidden, num_grid = 64, 16, 32, 20
    tr_degree = 2
    tr_knots = (0.25, 0.5, 0.75)          # np.arange(0.25, 1, 0.25)

    key = jax.random.PRNGKey(0)
    k_a, k_x, k_t, k_p = jax.random.split(key, 4)

    A = (jax.random.uniform(k_a, (N, N)) < 0.2).astype(jnp.float32)
    A = jnp.maximum(A, A.T)
    A = jnp.maximum(A, jnp.eye(N, dtype=jnp.float32))    # self-loops: degree>0
    X = jax.random.normal(k_x, (N, Xshape), jnp.float32)
    T = (jax.random.uniform(k_t, (N,)) < 0.5).astype(jnp.float32)

    params = init_params(k_p, Xshape, hidden, num_grid, len(tr_knots),
                         tr_degree)

    outs = targeted_model_forward(params, A, X, T, num_grid=num_grid,
                                  tr_knots=tr_knots, tr_degree=tr_degree)
    outs = jax.block_until_ready(outs)

    g_T_hat, g_Z_hat, Q_hat, epsilon, embeddings, navgT = outs
    assert g_T_hat.shape == (N, 1)
    assert g_Z_hat.shape == (N, 1)
    assert Q_hat.shape == (N, 1)
    assert epsilon.shape == (N,)
    assert embeddings.shape == (N, hidden // 2)
    assert navgT.shape == (N,)
    for o in (g_T_hat, g_Z_hat, Q_hat, epsilon, embeddings, navgT):
        assert bool(jnp.all(jnp.isfinite(o)))
    print("KERNEL_OK")
</pallas_src>

<mosaic_0001>
module attributes {stable_mosaic.version = 11 : i64} {
  func.func @_fused_forward_kernel(%arg0: i32, %arg1: memref<32x64xi8, #tpu.memory_space<vmem>>, %arg2: memref<64x18xbf16, #tpu.memory_space<vmem>>, %arg3: memref<16x32xbf16, #tpu.memory_space<vmem>>, %arg4: memref<1x32xf32, #tpu.memory_space<vmem>>, %arg5: memref<32x32xbf16, #tpu.memory_space<vmem>>, %arg6: memref<16x32xbf16, #tpu.memory_space<vmem>>, %arg7: memref<1x32xf32, #tpu.memory_space<vmem>>, %arg8: memref<32x32xbf16, #tpu.memory_space<vmem>>, %arg9: memref<1x32xf32, #tpu.memory_space<vmem>>, %arg10: memref<32x16xbf16, #tpu.memory_space<vmem>>, %arg11: memref<1x16xf32, #tpu.memory_space<vmem>>, %arg12: memref<16x32xbf16, #tpu.memory_space<vmem>>, %arg13: memref<1x32xf32, #tpu.memory_space<vmem>>, %arg14: memref<32x1xbf16, #tpu.memory_space<vmem>>, %arg15: memref<1x1xf32, #tpu.memory_space<vmem>>, %arg16: memref<16x21xbf16, #tpu.memory_space<vmem>>, %arg17: memref<1x21xf32, #tpu.memory_space<vmem>>, %arg18: memref<16x128xbf16, #tpu.memory_space<vmem>>, %arg19: memref<1x128xf32, #tpu.memory_space<vmem>>, %arg20: memref<1x128xf32, #tpu.memory_space<vmem>>, %arg21: memref<128x64xbf16, #tpu.memory_space<vmem>>, %arg22: memref<1x64xf32, #tpu.memory_space<vmem>>, %arg23: memref<64x2xbf16, #tpu.memory_space<vmem>>, %arg24: memref<1x2xf32, #tpu.memory_space<vmem>>, %arg25: memref<6x2xf32, #tpu.memory_space<vmem>>, %arg26: memref<32x24xf32, #tpu.memory_space<vmem>>) attributes {dimension_semantics = [#tpu.dimension_semantics<parallel>], iteration_bounds = array<i64: 2>, scalar_prefetch = 0 : i64, scratch_operands = 0 : i64, tpu.core_type = #tpu.core_type<tc>, window_params = [{transform_indices = @transform_0, window_bounds = array<i64: 32, 64>}, {pipeline_mode = #tpu.pipeline_mode<synchronous>, transform_indices = @transform_1, window_bounds = array<i64: 64, 18>}, {pipeline_mode = #tpu.pipeline_mode<synchronous>, transform_indices = @transform_2, window_bounds = array<i64: 16, 32>}, {pipeline_mode = #tpu.pipeline_mode<synchronous>, transform_indices = @transform_3, window_bounds = array<i64: 1, 32>}, {pipeline_mode = #tpu.pipeline_mode<synchronous>, transform_indices = @transform_4, window_bounds = array<i64: 32, 32>}, {pipeline_mode = #tpu.pipeline_mode<synchronous>, transform_indices = @transform_5, window_bounds = array<i64: 16, 32>}, {pipeline_mode = #tpu.pipeline_mode<synchronous>, transform_indices = @transform_6, window_bounds = array<i64: 1, 32>}, {pipeline_mode = #tpu.pipeline_mode<synchronous>, transform_indices = @transform_7, window_bounds = array<i64: 32, 32>}, {pipeline_mode = #tpu.pipeline_mode<synchronous>, transform_indices = @transform_8, window_bounds = array<i64: 1, 32>}, {pipeline_mode = #tpu.pipeline_mode<synchronous>, transform_indices = @transform_9, window_bounds = array<i64: 32, 16>}, {pipeline_mode = #tpu.pipeline_mode<synchronous>, transform_indices = @transform_10, window_bounds = array<i64: 1, 16>}, {pipeline_mode = #tpu.pipeline_mode<synchronous>, transform_indices = @transform_11, window_bounds = array<i64: 16, 32>}, {pipeline_mode = #tpu.pipeline_mode<synchronous>, transform_indices = @transform_12, window_bounds = array<i64: 1, 32>}, {pipeline_mode = #tpu.pipeline_mode<synchronous>, transform_indices = @transform_13, window_bounds = array<i64: 32, 1>}, {pipeline_mode = #tpu.pipeline_mode<synchronous>, transform_indices = @transform_14, window_bounds = array<i64: 1, 1>}, {pipeline_mode = #tpu.pipeline_mode<synchronous>, transform_indices = @transform_15, window_bounds = array<i64: 16, 21>}, {pipeline_mode = #tpu.pipeline_mode<synchronous>, transform_indices = @transform_16, window_bounds = array<i64: 1, 21>}, {pipeline_mode = #tpu.pipeline_mode<synchronous>, transform_indices = @transform_17, window_bounds = array<i64: 16, 128>}, {pipeline_mode = #tpu.pipeline_mode<synchronous>, transform_indices = @transform_18, window_bounds = array<i64: 1, 128>}, {pipeline_mode = #tpu.pipeline_mode<synchronous>, transform_indices = @transform_19, window_bounds = array<i64: 1, 128>}, {pipeline_mode = #tpu.pipeline_mode<synchronous>, transform_indices = @transform_20, window_bounds = array<i64: 128, 64>}, {pipeline_mode = #tpu.pipeline_mode<synchronous>, transform_indices = @transform_21, window_bounds = array<i64: 1, 64>}, {pipeline_mode = #tpu.pipeline_mode<synchronous>, transform_indices = @transform_22, window_bounds = array<i64: 64, 2>}, {pipeline_mode = #tpu.pipeline_mode<synchronous>, transform_indices = @transform_23, window_bounds = array<i64: 1, 2>}, {pipeline_mode = #tpu.pipeline_mode<synchronous>, transform_indices = @transform_24, window_bounds = array<i64: 6, 2>}, {transform_indices = @transform_25, window_bounds = array<i64: 32, 24>}]} {
    %c0 = arith.constant 0 : index
    %c0_0 = arith.constant 0 : index
    %0 = vector.load %arg1[%c0, %c0_0] : memref<32x64xi8, #tpu.memory_space<vmem>>, vector<32x64xi8>
    %1 = arith.sitofp %0 : vector<32x64xi8> to vector<32x64xbf16>
    %c0_1 = arith.constant 0 : index
    %c0_2 = arith.constant 0 : index
    %2 = vector.load %arg2[%c0_1, %c0_2] : memref<64x18xbf16, #tpu.memory_space<vmem>>, vector<64x18xbf16>
    %cst = arith.constant dense<0.000000e+00> : vector<32x18xf32>
    %3 = tpu.matmul %1, %2, %cst {dimension_numbers = #tpu.dot_dimension_numbers<[1], [0], [0], [1], [0, 0, 1, 1], [], []>} : vector<32x64xbf16>, vector<64x18xbf16>, vector<32x18xf32> -> vector<32x18xf32>
    %4 = vector.extract_strided_slice %3 {offsets = [0, 0], sizes = [32, 16], strides = [1, 1]} : vector<32x18xf32> to vector<32x16xf32>
    %5 = vector.extract_strided_slice %3 {offsets = [0, 16], sizes = [32, 1], strides = [1, 1]} : vector<32x18xf32> to vector<32x1xf32>
    %6 = vector.extract_strided_slice %3 {offsets = [0, 17], sizes = [32, 1], strides = [1, 1]} : vector<32x18xf32> to vector<32x1xf32>
    %7 = arith.truncf %4 : vector<32x16xf32> to vector<32x16xbf16>
    %c0_3 = arith.constant 0 : index
    %c0_4 = arith.constant 0 : index
    %8 = vector.load %arg3[%c0_3, %c0_4] : memref<16x32xbf16, #tpu.memory_space<vmem>>, vector<16x32xbf16>
    %cst_5 = arith.constant dense<0.000000e+00> : vector<32x32xf32>
    %9 = tpu.matmul %7, %8, %cst_5 {dimension_numbers = #tpu.dot_dimension_numbers<[1], [0], [0], [1], [0, 0, 1, 1], [], []>} : vector<32x16xbf16>, vector<16x32xbf16>, vector<32x32xf32> -> vector<32x32xf32>
    %c0_6 = arith.constant 0 : index
    %c0_7 = arith.constant 0 : index
    %10 = vector.load %arg4[%c0_6, %c0_7] : memref<1x32xf32, #tpu.memory_space<vmem>>, vector<1x32xf32>
    %11 = vector.broadcast %10 : vector<1x32xf32> to vector<32x32xf32>
    %12 = arith.addf %9, %11 : vector<32x32xf32>
    %cst_8 = arith.constant 0.000000e+00 : f32
    %13 = vector.broadcast %cst_8 : f32 to vector<32x32xf32>
    %14 = arith.maximumf %12, %13 : vector<32x32xf32>
    %c32_i32 = arith.constant 32 : i32
    %15 = arith.muli %arg0, %c32_i32 : i32
    %16 = tpu.assume_multiple %15, 32 : i32
    %17 = arith.index_cast %16 : i32 to index
    %c0_9 = arith.constant 0 : index
    %18 = vector.load %arg2[%17, %c0_9] : memref<64x18xbf16, #tpu.memory_space<vmem>>, vector<32x18xbf16>
    %19 = vector.extract_strided_slice %18 {offsets = [0, 0], sizes = [32, 16], strides = [1, 1]} : vector<32x18xbf16> to vector<32x16xbf16>
    %20 = vector.extract_strided_slice %18 {offsets = [0, 16], sizes = [32, 1], strides = [1, 1]} : vector<32x18xbf16> to vector<32x1xbf16>
    %21 = arith.extf %20 : vector<32x1xbf16> to vector<32x1xf32>
    %cst_10 = arith.constant 9.99999996E-13 : f32
    %22 = vector.broadcast %cst_10 : f32 to vector<32x1xf32>
    %23 = arith.maximumf %6, %22 : vector<32x1xf32>
    %24 = arith.divf %5, %23 : vector<32x1xf32>
    %25 = arith.truncf %14 : vector<32x32xf32> to vector<32x32xbf16>
    %c0_11 = arith.constant 0 : index
    %c0_12 = arith.constant 0 : index
    %26 = vector.load %arg5[%c0_11, %c0_12] : memref<32x32xbf16, #tpu.memory_space<vmem>>, vector<32x32xbf16>
    %cst_13 = arith.constant dense<0.000000e+00> : vector<32x32xf32>
    %27 = tpu.matmul %25, %26, %cst_13 {dimension_numbers = #tpu.dot_dimension_numbers<[1], [0], [0], [1], [0, 0, 1, 1], [], []>} : vector<32x32xbf16>, vector<32x32xbf16>, vector<32x32xf32> -> vector<32x32xf32>
    %c0_14 = arith.constant 0 : index
    %c0_15 = arith.constant 0 : index
    %28 = vector.load %arg6[%c0_14, %c0_15] : memref<16x32xbf16, #tpu.memory_space<vmem>>, vector<16x32xbf16>
    %cst_16 = arith.constant dense<0.000000e+00> : vector<32x32xf32>
    %29 = tpu.matmul %19, %28, %cst_16 {dimension_numbers = #tpu.dot_dimension_numbers<[1], [0], [0], [1], [0, 0, 1, 1], [], []>} : vector<32x16xbf16>, vector<16x32xbf16>, vector<32x32xf32> -> vector<32x32xf32>
    %30 = arith.addf %27, %29 : vector<32x32xf32>
    %c0_17 = arith.constant 0 : index
    %c0_18 = arith.constant 0 : index
    %31 = vector.load %arg7[%c0_17, %c0_18] : memref<1x32xf32, #tpu.memory_space<vmem>>, vector<1x32xf32>
    %32 = vector.broadcast %31 : vector<1x32xf32> to vector<32x32xf32>
    %33 = arith.addf %30, %32 : vector<32x32xf32>
    %cst_19 = arith.constant 0.000000e+00 : f32
    %34 = vector.broadcast %cst_19 : f32 to vector<32x32xf32>
    %35 = arith.maximumf %33, %34 : vector<32x32xf32>
    %36 = arith.truncf %35 : vector<32x32xf32> to vector<32x32xbf16>
    %c0_20 = arith.constant 0 : index
    %c0_21 = arith.constant 0 : index
    %37 = vector.load %arg8[%c0_20, %c0_21] : memref<32x32xbf16, #tpu.memory_space<vmem>>, vector<32x32xbf16>
    %cst_22 = arith.constant dense<0.000000e+00> : vector<32x32xf32>
    %38 = tpu.matmul %36, %37, %cst_22 {dimension_numbers = #tpu.dot_dimension_numbers<[1], [0], [0], [1], [0, 0, 1, 1], [], []>} : vector<32x32xbf16>, vector<32x32xbf16>, vector<32x32xf32> -> vector<32x32xf32>
    %c0_23 = arith.constant 0 : index
    %c0_24 = arith.constant 0 : index
    %39 = vector.load %arg9[%c0_23, %c0_24] : memref<1x32xf32, #tpu.memory_space<vmem>>, vector<1x32xf32>
    %40 = vector.broadcast %39 : vector<1x32xf32> to vector<32x32xf32>
    %41 = arith.addf %38, %40 : vector<32x32xf32>
    %cst_25 = arith.constant 0.000000e+00 : f32
    %42 = vector.broadcast %cst_25 : f32 to vector<32x32xf32>
    %43 = arith.maximumf %41, %42 : vector<32x32xf32>
    %44 = arith.truncf %43 : vector<32x32xf32> to vector<32x32xbf16>
    %c0_26 = arith.constant 0 : index
    %c0_27 = arith.constant 0 : index
    %45 = vector.load %arg10[%c0_26, %c0_27] : memref<32x16xbf16, #tpu.memory_space<vmem>>, vector<32x16xbf16>
    %cst_28 = arith.constant dense<0.000000e+00> : vector<32x16xf32>
    %46 = tpu.matmul %44, %45, %cst_28 {dimension_numbers = #tpu.dot_dimension_numbers<[1], [0], [0], [1], [0, 0, 1, 1], [], []>} : vector<32x32xbf16>, vector<32x16xbf16>, vector<32x16xf32> -> vector<32x16xf32>
    %c0_29 = arith.constant 0 : index
    %c0_30 = arith.constant 0 : index
    %47 = vector.load %arg11[%c0_29, %c0_30] : memref<1x16xf32, #tpu.memory_space<vmem>>, vector<1x16xf32>
    %48 = vector.broadcast %47 : vector<1x16xf32> to vector<32x16xf32>
    %49 = arith.addf %46, %48 : vector<32x16xf32>
    %50 = arith.truncf %49 : vector<32x16xf32> to vector<32x16xbf16>
    %c0_31 = arith.constant 0 : index
    %c0_32 = arith.constant 0 : index
    %51 = vector.load %arg12[%c0_31, %c0_32] : memref<16x32xbf16, #tpu.memory_space<vmem>>, vector<16x32xbf16>
    %cst_33 = arith.constant dense<0.000000e+00> : vector<32x32xf32>
    %52 = tpu.matmul %50, %51, %cst_33 {dimension_numbers = #tpu.dot_dimension_numbers<[1], [0], [0], [1], [0, 0, 1, 1], [], []>} : vector<32x16xbf16>, vector<16x32xbf16>, vector<32x32xf32> -> vector<32x32xf32>
    %c0_34 = arith.constant 0 : index
    %c0_35 = arith.constant 0 : index
    %53 = vector.load %arg13[%c0_34, %c0_35] : memref<1x32xf32, #tpu.memory_space<vmem>>, vector<1x32xf32>
    %54 = vector.broadcast %53 : vector<1x32xf32> to vector<32x32xf32>
    %55 = arith.addf %52, %54 : vector<32x32xf32>
    %cst_36 = arith.constant 0.000000e+00 : f32
    %56 = vector.broadcast %cst_36 : f32 to vector<32x32xf32>
    %57 = arith.maximumf %55, %56 : vector<32x32xf32>
    %58 = arith.truncf %57 : vector<32x32xf32> to vector<32x32xbf16>
    %c0_37 = arith.constant 0 : index
    %c0_38 = arith.constant 0 : index
    %59 = vector.load %arg14[%c0_37, %c0_38] : memref<32x1xbf16, #tpu.memory_space<vmem>>, vector<32x1xbf16>
    %cst_39 = arith.constant dense<0.000000e+00> : vector<32x1xf32>
    %60 = tpu.matmul %58, %59, %cst_39 {dimension_numbers = #tpu.dot_dimension_numbers<[1], [0], [0], [1], [0, 0, 1, 1], [], []>} : vector<32x32xbf16>, vector<32x1xbf16>, vector<32x1xf32> -> vector<32x1xf32>
    %c0_40 = arith.constant 0 : index
    %c0_41 = arith.constant 0 : index
    %61 = vector.load %arg15[%c0_40, %c0_41] : memref<1x1xf32, #tpu.memory_space<vmem>>, vector<1x1xf32>
    %62 = vector.broadcast %61 : vector<1x1xf32> to vector<32x1xf32>
    %63 = arith.addf %60, %62 : vector<32x1xf32>
    %64 = math.absf %63 : vector<32x1xf32>
    %cst_42 = arith.constant 0.000000e+00 : f32
    %65 = vector.broadcast %cst_42 : f32 to vector<32x1xf32>
    %66 = arith.subf %65, %64 : vector<32x1xf32>
    %67 = math.exp %66 : vector<32x1xf32>
    %cst_43 = arith.constant 1.000000e+00 : f32
    %68 = vector.broadcast %cst_43 : f32 to vector<32x1xf32>
    %69 = arith.addf %68, %67 : vector<32x1xf32>
    %70 = tpu.reciprocal %69 {approx = true} : vector<32x1xf32> -> vector<32x1xf32>
    %cst_44 = arith.constant 0.000000e+00 : f32
    %71 = vector.broadcast %cst_44 : f32 to vector<32x1xf32>
    %72 = arith.cmpf oge, %63, %71 : vector<32x1xf32>
    %73 = arith.mulf %67, %70 : vector<32x1xf32>
    %74 = arith.select %72, %70, %73 : vector<32x1xi1>, vector<32x1xf32>
    %75 = arith.truncf %49 : vector<32x16xf32> to vector<32x16xbf16>
    %c0_45 = arith.constant 0 : index
    %c0_46 = arith.constant 0 : index
    %76 = vector.load %arg16[%c0_45, %c0_46] : memref<16x21xbf16, #tpu.memory_space<vmem>>, vector<16x21xbf16>
    %cst_47 = arith.constant dense<0.000000e+00> : vector<32x21xf32>
    %77 = tpu.matmul %75, %76, %cst_47 {dimension_numbers = #tpu.dot_dimension_numbers<[1], [0], [0], [1], [0, 0, 1, 1], [], []>} : vector<32x16xbf16>, vector<16x21xbf16>, vector<32x21xf32> -> vector<32x21xf32>
    %c0_48 = arith.constant 0 : index
    %c0_49 = arith.constant 0 : index
    %78 = vector.load %arg17[%c0_48, %c0_49] : memref<1x21xf32, #tpu.memory_space<vmem>>, vector<1x21xf32>
    %79 = vector.broadcast %78 : vector<1x21xf32> to vector<32x21xf32>
    %80 = arith.addf %77, %79 : vector<32x21xf32>
    %cst_50 = arith.constant dense<0xFF800000> : vector<32xf32>
    %81 = vector.multi_reduction <maximumf>, %80, %cst_50 [1] : vector<32x21xf32> to vector<32xf32>
    %82 = vector.shape_cast %81 : vector<32xf32> to vector<32x1xf32>
    %83 = vector.broadcast %82 : vector<32x1xf32> to vector<32x21xf32>
    %84 = arith.subf %80, %83 : vector<32x21xf32>
    %85 = math.exp %84 : vector<32x21xf32>
    %cst_51 = arith.constant dense<0.000000e+00> : vector<32xf32>
    %86 = vector.multi_reduction <add>, %85, %cst_51 [1] : vector<32x21xf32> to vector<32xf32>
    %87 = vector.shape_cast %86 : vector<32xf32> to vector<32x1xf32>
    %88 = tpu.reciprocal %87 {approx = true} : vector<32x1xf32> -> vector<32x1xf32>
    %89 = vector.broadcast %88 : vector<32x1xf32> to vector<32x21xf32>
    %90 = arith.mulf %85, %89 : vector<32x21xf32>
    %cst_52 = arith.constant 2.000000e+01 : f32
    %91 = vector.broadcast %cst_52 : f32 to vector<32x1xf32>
    %92 = arith.mulf %24, %91 : vector<32x1xf32>
    %93 = math.floor %92 : vector<32x1xf32>
    %cst_53 = arith.constant 0.000000e+00 : f32
    %cst_54 = arith.constant 1.900000e+01 : f32
    %94 = vector.broadcast %cst_53 : f32 to vector<32x1xf32>
    %95 = arith.maximumf %94, %93 : vector<32x1xf32>
    %96 = vector.broadcast %cst_54 : f32 to vector<32x1xf32>
    %97 = arith.minimumf %96, %95 : vector<32x1xf32>
    %98 = arith.subf %92, %97 : vector<32x1xf32>
    %99 = arith.fptosi %97 : vector<32x1xf32> to vector<32x1xi32>
    %100 = tpu.iota {dimensions = array<i32: 1>} : vector<32x21xi32>
    %101 = vector.broadcast %99 : vector<32x1xi32> to vector<32x21xi32>
    %102 = arith.cmpi eq, %100, %101 : vector<32x21xi32>
    %cst_55 = arith.constant 1.000000e+00 : f32
    %103 = vector.broadcast %cst_55 : f32 to vector<32x1xf32>
    %104 = arith.subf %103, %98 : vector<32x1xf32>
    %cst_56 = arith.constant 0.000000e+00 : f32
    %105 = vector.shape_cast %104 : vector<32x1xf32> to vector<32x1xf32>
    %106 = vector.broadcast %105 : vector<32x1xf32> to vector<32x21xf32>
    %107 = vector.broadcast %cst_56 : f32 to vector<32x21xf32>
    %108 = arith.select %102, %106, %107 : vector<32x21xi1>, vector<32x21xf32>
    %c1_i32 = arith.constant 1 : i32
    %109 = vector.broadcast %c1_i32 : i32 to vector<32x1xi32>
    %110 = arith.addi %99, %109 : vector<32x1xi32>
    %111 = vector.broadcast %110 : vector<32x1xi32> to vector<32x21xi32>
    %112 = arith.cmpi eq, %100, %111 : vector<32x21xi32>
    %cst_57 = arith.constant 0.000000e+00 : f32
    %113 = vector.shape_cast %98 : vector<32x1xf32> to vector<32x1xf32>
    %114 = vector.broadcast %113 : vector<32x1xf32> to vector<32x21xf32>
    %115 = vector.broadcast %cst_57 : f32 to vector<32x21xf32>
    %116 = arith.select %112, %114, %115 : vector<32x21xi1>, vector<32x21xf32>
    %117 = arith.addf %108, %116 : vector<32x21xf32>
    %118 = arith.mulf %90, %117 : vector<32x21xf32>
    %cst_58 = arith.constant dense<0.000000e+00> : vector<32xf32>
    %119 = vector.multi_reduction <add>, %118, %cst_58 [1] : vector<32x21xf32> to vector<32xf32>
    %120 = vector.shape_cast %119 : vector<32xf32> to vector<32x1xf32>
    %121 = arith.truncf %49 : vector<32x16xf32> to vector<32x16xbf16>
    %c0_59 = arith.constant 0 : index
    %c0_60 = arith.constant 0 : index
    %122 = vector.load %arg18[%c0_59, %c0_60] : memref<16x128xbf16, #tpu.memory_space<vmem>>, vector<16x128xbf16>
    %cst_61 = arith.constant dense<0.000000e+00> : vector<32x128xf32>
    %123 = tpu.matmul %121, %122, %cst_61 {dimension_numbers = #tpu.dot_dimension_numbers<[1], [0], [0], [1], [0, 0, 1, 1], [], []>} : vector<32x16xbf16>, vector<16x128xbf16>, vector<32x128xf32> -> vector<32x128xf32>
    %c0_62 = arith.constant 0 : index
    %c0_63 = arith.constant 0 : index
    %124 = vector.load %arg19[%c0_62, %c0_63] : memref<1x128xf32, #tpu.memory_space<vmem>>, vector<1x128xf32>
    %125 = vector.broadcast %24 : vector<32x1xf32> to vector<32x128xf32>
    %126 = vector.broadcast %124 : vector<1x128xf32> to vector<32x128xf32>
    %127 = arith.mulf %125, %126 : vector<32x128xf32>
    %128 = arith.addf %123, %127 : vector<32x128xf32>
    %c0_64 = arith.constant 0 : index
    %c0_65 = arith.constant 0 : index
    %129 = vector.load %arg20[%c0_64, %c0_65] : memref<1x128xf32, #tpu.memory_space<vmem>>, vector<1x128xf32>
    %130 = vector.broadcast %129 : vector<1x128xf32> to vector<32x128xf32>
    %131 = arith.addf %128, %130 : vector<32x128xf32>
    %cst_66 = arith.constant 0.000000e+00 : f32
    %132 = vector.broadcast %cst_66 : f32 to vector<32x128xf32>
    %133 = arith.maximumf %131, %132 : vector<32x128xf32>
    %134 = arith.truncf %133 : vector<32x128xf32> to vector<32x128xbf16>
    %c0_67 = arith.constant 0 : index
    %c0_68 = arith.constant 0 : index
    %135 = vector.load %arg21[%c0_67, %c0_68] : memref<128x64xbf16, #tpu.memory_space<vmem>>, vector<128x64xbf16>
    %cst_69 = arith.constant dense<0.000000e+00> : vector<32x64xf32>
    %136 = tpu.matmul %134, %135, %cst_69 {dimension_numbers = #tpu.dot_dimension_numbers<[1], [0], [0], [1], [0, 0, 1, 1], [], []>} : vector<32x128xbf16>, vector<128x64xbf16>, vector<32x64xf32> -> vector<32x64xf32>
    %c0_70 = arith.constant 0 : index
    %c0_71 = arith.constant 0 : index
    %137 = vector.load %arg22[%c0_70, %c0_71] : memref<1x64xf32, #tpu.memory_space<vmem>>, vector<1x64xf32>
    %138 = vector.broadcast %137 : vector<1x64xf32> to vector<32x64xf32>
    %139 = arith.addf %136, %138 : vector<32x64xf32>
    %cst_72 = arith.constant 0.000000e+00 : f32
    %140 = vector.broadcast %cst_72 : f32 to vector<32x64xf32>
    %141 = arith.maximumf %139, %140 : vector<32x64xf32>
    %142 = arith.truncf %141 : vector<32x64xf32> to vector<32x64xbf16>
    %c0_73 = arith.constant 0 : index
    %c0_74 = arith.constant 0 : index
    %143 = vector.load %arg23[%c0_73, %c0_74] : memref<64x2xbf16, #tpu.memory_space<vmem>>, vector<64x2xbf16>
    %cst_75 = arith.constant dense<0.000000e+00> : vector<32x2xf32>
    %144 = tpu.matmul %142, %143, %cst_75 {dimension_numbers = #tpu.dot_dimension_numbers<[1], [0], [0], [1], [0, 0, 1, 1], [], []>} : vector<32x64xbf16>, vector<64x2xbf16>, vector<32x2xf32> -> vector<32x2xf32>
    %c0_76 = arith.constant 0 : index
    %c0_77 = arith.constant 0 : index
    %145 = vector.load %arg24[%c0_76, %c0_77] : memref<1x2xf32, #tpu.memory_space<vmem>>, vector<1x2xf32>
    %146 = vector.broadcast %145 : vector<1x2xf32> to vector<32x2xf32>
    %147 = arith.addf %144, %146 : vector<32x2xf32>
    %148 = vector.extract_strided_slice %147 {offsets = [0, 0], sizes = [32, 1], strides = [1, 1]} : vector<32x2xf32> to vector<32x1xf32>
    %149 = arith.mulf %21, %148 : vector<32x1xf32>
    %cst_78 = arith.constant 1.000000e+00 : f32
    %150 = vector.broadcast %cst_78 : f32 to vector<32x1xf32>
    %151 = arith.subf %150, %21 : vector<32x1xf32>
    %152 = vector.extract_strided_slice %147 {offsets = [0, 1], sizes = [32, 1], strides = [1, 1]} : vector<32x2xf32> to vector<32x1xf32>
    %153 = arith.mulf %151, %152 : vector<32x1xf32>
    %154 = arith.addf %149, %153 : vector<32x1xf32>
    %cst_79 = arith.constant 0.000000e+00 : f32
    %155 = vector.broadcast %cst_79 : f32 to vector<32x2xf32>
    %c2 = arith.constant 2 : index
    %c0_80 = arith.constant 0 : index
    %156 = vector.load %arg25[%c2, %c0_80] : memref<6x2xf32, #tpu.memory_space<vmem>>, vector<1x2xf32>
    %157 = vector.broadcast %156 : vector<1x2xf32> to vector<32x2xf32>
    %158 = arith.addf %155, %157 : vector<32x2xf32>
    %159 = vector.broadcast %24 : vector<32x1xf32> to vector<32x2xf32>
    %160 = arith.mulf %158, %159 : vector<32x2xf32>
    %c1 = arith.constant 1 : index
    %c0_81 = arith.constant 0 : index
    %161 = vector.load %arg25[%c1, %c0_81] : memref<6x2xf32, #tpu.memory_space<vmem>>, vector<1x2xf32>
    %162 = vector.broadcast %161 : vector<1x2xf32> to vector<32x2xf32>
    %163 = arith.addf %160, %162 : vector<32x2xf32>
    %164 = vector.broadcast %24 : vector<32x1xf32> to vector<32x2xf32>
    %165 = arith.mulf %163, %164 : vector<32x2xf32>
    %c0_82 = arith.constant 0 : index
    %c0_83 = arith.constant 0 : index
    %166 = vector.load %arg25[%c0_82, %c0_83] : memref<6x2xf32, #tpu.memory_space<vmem>>, vector<1x2xf32>
    %167 = vector.broadcast %166 : vector<1x2xf32> to vector<32x2xf32>
    %168 = arith.addf %165, %167 : vector<32x2xf32>
    %cst_84 = arith.constant 2.500000e-01 : f32
    %169 = vector.broadcast %cst_84 : f32 to vector<32x1xf32>
    %170 = arith.subf %24, %169 : vector<32x1xf32>
    %cst_85 = arith.constant 0.000000e+00 : f32
    %171 = vector.broadcast %cst_85 : f32 to vector<32x1xf32>
    %172 = arith.maximumf %170, %171 : vector<32x1xf32>
    %173 = arith.mulf %172, %172 : vector<32x1xf32>
    %c3 = arith.constant 3 : index
    %c0_86 = arith.constant 0 : index
    %174 = vector.load %arg25[%c3, %c0_86] : memref<6x2xf32, #tpu.memory_space<vmem>>, vector<1x2xf32>
    %175 = vector.broadcast %173 : vector<32x1xf32> to vector<32x2xf32>
    %176 = vector.broadcast %174 : vector<1x2xf32> to vector<32x2xf32>
    %177 = arith.mulf %175, %176 : vector<32x2xf32>
    %178 = arith.addf %168, %177 : vector<32x2xf32>
    %cst_87 = arith.constant 5.000000e-01 : f32
    %179 = vector.broadcast %cst_87 : f32 to vector<32x1xf32>
    %180 = arith.subf %24, %179 : vector<32x1xf32>
    %cst_88 = arith.constant 0.000000e+00 : f32
    %181 = vector.broadcast %cst_88 : f32 to vector<32x1xf32>
    %182 = arith.maximumf %180, %181 : vector<32x1xf32>
    %183 = arith.mulf %182, %182 : vector<32x1xf32>
    %c4 = arith.constant 4 : index
    %c0_89 = arith.constant 0 : index
    %184 = vector.load %arg25[%c4, %c0_89] : memref<6x2xf32, #tpu.memory_space<vmem>>, vector<1x2xf32>
    %185 = vector.broadcast %183 : vector<32x1xf32> to vector<32x2xf32>
    %186 = vector.broadcast %184 : vector<1x2xf32> to vector<32x2xf32>
    %187 = arith.mulf %185, %186 : vector<32x2xf32>
    %188 = arith.addf %178, %187 : vector<32x2xf32>
    %cst_90 = arith.constant 7.500000e-01 : f32
    %189 = vector.broadcast %cst_90 : f32 to vector<32x1xf32>
    %190 = arith.subf %24, %189 : vector<32x1xf32>
    %cst_91 = arith.constant 0.000000e+00 : f32
    %191 = vector.broadcast %cst_91 : f32 to vector<32x1xf32>
    %192 = arith.maximumf %190, %191 : vector<32x1xf32>
    %193 = arith.mulf %192, %192 : vector<32x1xf32>
    %c5 = arith.constant 5 : index
    %c0_92 = arith.constant 0 : index
    %194 = vector.load %arg25[%c5, %c0_92] : memref<6x2xf32, #tpu.memory_space<vmem>>, vector<1x2xf32>
    %195 = vector.broadcast %193 : vector<32x1xf32> to vector<32x2xf32>
    %196 = vector.broadcast %194 : vector<1x2xf32> to vector<32x2xf32>
    %197 = arith.mulf %195, %196 : vector<32x2xf32>
    %198 = arith.addf %188, %197 : vector<32x2xf32>
    %cst_93 = arith.constant 1.000000e+00 : f32
    %199 = vector.broadcast %cst_93 : f32 to vector<32x1xf32>
    %200 = arith.cmpf oeq, %21, %199 : vector<32x1xf32>
    %201 = vector.extract_strided_slice %198 {offsets = [0, 0], sizes = [32, 1], strides = [1, 1]} : vector<32x2xf32> to vector<32x1xf32>
    %202 = vector.extract_strided_slice %198 {offsets = [0, 1], sizes = [32, 1], strides = [1, 1]} : vector<32x2xf32> to vector<32x1xf32>
    %203 = arith.select %200, %201, %202 : vector<32x1xi1>, vector<32x1xf32>
    %204 = tpu.iota {dimensions = array<i32: 1>} : vector<32x8xi32>
    %c0_i32 = arith.constant 0 : i32
    %205 = vector.broadcast %c0_i32 : i32 to vector<32x8xi32>
    %206 = arith.cmpi eq, %204, %205 : vector<32x8xi32>
    %cst_94 = arith.constant 0.000000e+00 : f32
    %207 = vector.shape_cast %74 : vector<32x1xf32> to vector<32x1xf32>
    %208 = vector.broadcast %207 : vector<32x1xf32> to vector<32x8xf32>
    %209 = vector.broadcast %cst_94 : f32 to vector<32x8xf32>
    %210 = arith.select %206, %208, %209 : vector<32x8xi1>, vector<32x8xf32>
    %c1_i32_95 = arith.constant 1 : i32
    %211 = vector.broadcast %c1_i32_95 : i32 to vector<32x8xi32>
    %212 = arith.cmpi eq, %204, %211 : vector<32x8xi32>
    %cst_96 = arith.constant 0.000000e+00 : f32
    %213 = vector.shape_cast %120 : vector<32x1xf32> to vector<32x1xf32>
    %214 = vector.broadcast %213 : vector<32x1xf32> to vector<32x8xf32>
    %215 = vector.broadcast %cst_96 : f32 to vector<32x8xf32>
    %216 = arith.select %212, %214, %215 : vector<32x8xi1>, vector<32x8xf32>
    %217 = arith.addf %210, %216 : vector<32x8xf32>
    %c2_i32 = arith.constant 2 : i32
    %218 = vector.broadcast %c2_i32 : i32 to vector<32x8xi32>
    %219 = arith.cmpi eq, %204, %218 : vector<32x8xi32>
    %cst_97 = arith.constant 0.000000e+00 : f32
    %220 = vector.shape_cast %154 : vector<32x1xf32> to vector<32x1xf32>
    %221 = vector.broadcast %220 : vector<32x1xf32> to vector<32x8xf32>
    %222 = vector.broadcast %cst_97 : f32 to vector<32x8xf32>
    %223 = arith.select %219, %221, %222 : vector<32x8xi1>, vector<32x8xf32>
    %224 = arith.addf %217, %223 : vector<32x8xf32>
    %c3_i32 = arith.constant 3 : i32
    %225 = vector.broadcast %c3_i32 : i32 to vector<32x8xi32>
    %226 = arith.cmpi eq, %204, %225 : vector<32x8xi32>
    %cst_98 = arith.constant 0.000000e+00 : f32
    %227 = vector.shape_cast %203 : vector<32x1xf32> to vector<32x1xf32>
    %228 = vector.broadcast %227 : vector<32x1xf32> to vector<32x8xf32>
    %229 = vector.broadcast %cst_98 : f32 to vector<32x8xf32>
    %230 = arith.select %226, %228, %229 : vector<32x8xi1>, vector<32x8xf32>
    %231 = arith.addf %224, %230 : vector<32x8xf32>
    %c4_i32 = arith.constant 4 : i32
    %232 = vector.broadcast %c4_i32 : i32 to vector<32x8xi32>
    %233 = arith.cmpi eq, %204, %232 : vector<32x8xi32>
    %cst_99 = arith.constant 0.000000e+00 : f32
    %234 = vector.shape_cast %24 : vector<32x1xf32> to vector<32x1xf32>
    %235 = vector.broadcast %234 : vector<32x1xf32> to vector<32x8xf32>
    %236 = vector.broadcast %cst_99 : f32 to vector<32x8xf32>
    %237 = arith.select %233, %235, %236 : vector<32x8xi1>, vector<32x8xf32>
    %238 = arith.addf %231, %237 : vector<32x8xf32>
    %239 = tpu.concatenate %49, %238 in 1 : vector<32x16xf32>, vector<32x8xf32> -> vector<32x24xf32>
    %c0_100 = arith.constant 0 : index
    %c0_101 = arith.constant 0 : index
    %240 = vector.load %arg26[%c0_100, %c0_101] : memref<32x24xf32, #tpu.memory_space<vmem>>, vector<32x24xf32>
    tpu.vector_store %arg26[%c0_100, %c0_101], %239 {strides = array<i32>} : memref<32x24xf32, #tpu.memory_space<vmem>>, vector<32x24xf32>,
    return
  }
  func.func @transform_0(%arg0: i32) -> (i32, i32) {
    %c0_i32 = arith.constant 0 : i32
    %c0_i32_0 = arith.constant 0 : i32
    return %arg0, %c0_i32 : i32, i32
  }
  func.func @transform_1(%arg0: i32) -> (i32, i32) {
    %c0_i32 = arith.constant 0 : i32
    %c0_i32_0 = arith.constant 0 : i32
    %c0_i32_1 = arith.constant 0 : i32
    return %c0_i32, %c0_i32_0 : i32, i32
  }
  func.func @transform_2(%arg0: i32) -> (i32, i32) {
    %c0_i32 = arith.constant 0 : i32
    %c0_i32_0 = arith.constant 0 : i32
    %c0_i32_1 = arith.constant 0 : i32
    return %c0_i32, %c0_i32_0 : i32, i32
  }
  func.func @transform_3(%arg0: i32) -> (i32, i32) {
    %c0_i32 = arith.constant 0 : i32
    %c0_i32_0 = arith.constant 0 : i32
    %c0_i32_1 = arith.constant 0 : i32
    return %c0_i32, %c0_i32_0 : i32, i32
  }
  func.func @transform_4(%arg0: i32) -> (i32, i32) {
    %c0_i32 = arith.constant 0 : i32
    %c0_i32_0 = arith.constant 0 : i32
    %c0_i32_1 = arith.constant 0 : i32
    return %c0_i32, %c0_i32_0 : i32, i32
  }
  func.func @transform_5(%arg0: i32) -> (i32, i32) {
    %c0_i32 = arith.constant 0 : i32
    %c0_i32_0 = arith.constant 0 : i32
    %c0_i32_1 = arith.constant 0 : i32
    return %c0_i32, %c0_i32_0 : i32, i32
  }
  func.func @transform_6(%arg0: i32) -> (i32, i32) {
    %c0_i32 = arith.constant 0 : i32
    %c0_i32_0 = arith.constant 0 : i32
    %c0_i32_1 = arith.constant 0 : i32
    return %c0_i32, %c0_i32_0 : i32, i32
  }
  func.func @transform_7(%arg0: i32) -> (i32, i32) {
    %c0_i32 = arith.constant 0 : i32
    %c0_i32_0 = arith.constant 0 : i32
    %c0_i32_1 = arith.constant 0 : i32
    return %c0_i32, %c0_i32_0 : i32, i32
  }
  func.func @transform_8(%arg0: i32) -> (i32, i32) {
    %c0_i32 = arith.constant 0 : i32
    %c0_i32_0 = arith.constant 0 : i32
    %c0_i32_1 = arith.constant 0 : i32
    return %c0_i32, %c0_i32_0 : i32, i32
  }
  func.func @transform_9(%arg0: i32) -> (i32, i32) {
    %c0_i32 = arith.constant 0 : i32
    %c0_i32_0 = arith.constant 0 : i32
    %c0_i32_1 = arith.constant 0 : i32
    return %c0_i32, %c0_i32_0 : i32, i32
  }
  func.func @transform_10(%arg0: i32) -> (i32, i32) {
    %c0_i32 = arith.constant 0 : i32
    %c0_i32_0 = arith.constant 0 : i32
    %c0_i32_1 = arith.constant 0 : i32
    return %c0_i32, %c0_i32_0 : i32, i32
  }
  func.func @transform_11(%arg0: i32) -> (i32, i32) {
    %c0_i32 = arith.constant 0 : i32
    %c0_i32_0 = arith.constant 0 : i32
    %c0_i32_1 = arith.constant 0 : i32
    return %c0_i32, %c0_i32_0 : i32, i32
  }
  func.func @transform_12(%arg0: i32) -> (i32, i32) {
    %c0_i32 = arith.constant 0 : i32
    %c0_i32_0 = arith.constant 0 : i32
    %c0_i32_1 = arith.constant 0 : i32
    return %c0_i32, %c0_i32_0 : i32, i32
  }
  func.func @transform_13(%arg0: i32) -> (i32, i32) {
    %c0_i32 = arith.constant 0 : i32
    %c0_i32_0 = arith.constant 0 : i32
    %c0_i32_1 = arith.constant 0 : i32
    return %c0_i32, %c0_i32_0 : i32, i32
  }
  func.func @transform_14(%arg0: i32) -> (i32, i32) {
    %c0_i32 = arith.constant 0 : i32
    %c0_i32_0 = arith.constant 0 : i32
    %c0_i32_1 = arith.constant 0 : i32
    return %c0_i32, %c0_i32_0 : i32, i32
  }
  func.func @transform_15(%arg0: i32) -> (i32, i32) {
    %c0_i32 = arith.constant 0 : i32
    %c0_i32_0 = arith.constant 0 : i32
    %c0_i32_1 = arith.constant 0 : i32
    return %c0_i32, %c0_i32_0 : i32, i32
  }
  func.func @transform_16(%arg0: i32) -> (i32, i32) {
    %c0_i32 = arith.constant 0 : i32
    %c0_i32_0 = arith.constant 0 : i32
    %c0_i32_1 = arith.constant 0 : i32
    return %c0_i32, %c0_i32_0 : i32, i32
  }
  func.func @transform_17(%arg0: i32) -> (i32, i32) {
    %c0_i32 = arith.constant 0 : i32
    %c0_i32_0 = arith.constant 0 : i32
    %c0_i32_1 = arith.constant 0 : i32
    return %c0_i32, %c0_i32_0 : i32, i32
  }
  func.func @transform_18(%arg0: i32) -> (i32, i32) {
    %c0_i32 = arith.constant 0 : i32
    %c0_i32_0 = arith.constant 0 : i32
    %c0_i32_1 = arith.constant 0 : i32
    return %c0_i32, %c0_i32_0 : i32, i32
  }
  func.func @transform_19(%arg0: i32) -> (i32, i32) {
    %c0_i32 = arith.constant 0 : i32
    %c0_i32_0 = arith.constant 0 : i32
    %c0_i32_1 = arith.constant 0 : i32
    return %c0_i32, %c0_i32_0 : i32, i32
  }
  func.func @transform_20(%arg0: i32) -> (i32, i32) {
    %c0_i32 = arith.constant 0 : i32
    %c0_i32_0 = arith.constant 0 : i32
    %c0_i32_1 = arith.constant 0 : i32
    return %c0_i32, %c0_i32_0 : i32, i32
  }
  func.func @transform_21(%arg0: i32) -> (i32, i32) {
    %c0_i32 = arith.constant 0 : i32
    %c0_i32_0 = arith.constant 0 : i32
    %c0_i32_1 = arith.constant 0 : i32
    return %c0_i32, %c0_i32_0 : i32, i32
  }
  func.func @transform_22(%arg0: i32) -> (i32, i32) {
    %c0_i32 = arith.constant 0 : i32
    %c0_i32_0 = arith.constant 0 : i32
    %c0_i32_1 = arith.constant 0 : i32
    return %c0_i32, %c0_i32_0 : i32, i32
  }
  func.func @transform_23(%arg0: i32) -> (i32, i32) {
    %c0_i32 = arith.constant 0 : i32
    %c0_i32_0 = arith.constant 0 : i32
    %c0_i32_1 = arith.constant 0 : i32
    return %c0_i32, %c0_i32_0 : i32, i32
  }
  func.func @transform_24(%arg0: i32) -> (i32, i32) {
    %c0_i32 = arith.constant 0 : i32
    %c0_i32_0 = arith.constant 0 : i32
    %c0_i32_1 = arith.constant 0 : i32
    return %c0_i32, %c0_i32_0 : i32, i32
  }
  func.func @transform_25(%arg0: i32) -> (i32, i32) {
    %c0_i32 = arith.constant 0 : i32
    %c0_i32_0 = arith.constant 0 : i32
    return %arg0, %c0_i32 : i32, i32
  }
}

</mosaic_0001>

<bundles_post_ra>
// kernel: tpu_custom_call.1
= control target key start
LH: loop header
LB: loop body
LE: loop exit
PB: predicated region body
PF: predicated region fallthrough
CT: control target
= control target key end

     0   :  { %s3407_s0 = inlined_call_operand.vmem [shape: s8[64,64], index: 0, kind: input, shape index: {}]   ;;  %s3408_s1 = inlined_call_operand.vmem [shape: bf16[64,18], index: 1, kind: input, shape index: {}]   ;;  %s3409_s2 = inlined_call_operand.vmem [shape: bf16[16,32], index: 2, kind: input, shape index: {}]   ;;  %s3410_s3 = inlined_call_operand.vmem [shape: f32[1,32], index: 3, kind: input, shape index: {}]   ;;  %s3411_s4 = inlined_call_operand.vmem [shape: bf16[32,32], index: 4, kind: input, shape index: {}]   ;;  %s3412_s5 = inlined_call_operand.vmem [shape: bf16[16,32], index: 5, kind: input, shape index: {}]   ;;  %s3413_s6 = inlined_call_operand.vmem [shape: f32[1,32], index: 6, kind: input, shape index: {}]   ;;  %s3414_s7 = inlined_call_operand.vmem [shape: bf16[32,32], index: 7, kind: input, shape index: {}]   ;;  %s3415_s8 = inlined_call_operand.vmem [shape: f32[1,32], index: 8, kind: input, shape index: {}]   ;;  %s3416_s9 = inlined_call_operand.vmem [shape: bf16[32,16], index: 9, kind: input, shape index: {}]   ;;  %s3417_s10 = inlined_call_operand.vmem [shape: f32[1,16], index: 10, kind: input, shape index: {}]   ;;  %s3418_s11 = inlined_call_operand.vmem [shape: bf16[16,32], index: 11, kind: input, shape index: {}]   ;;  %s3419_s12 = inlined_call_operand.vmem [shape: f32[1,32], index: 12, kind: input, shape index: {}]   ;;  %s3420_s13 = inlined_call_operand.vmem [shape: bf16[32,1], index: 13, kind: input, shape index: {}]   ;;  %s3421_s14 = inlined_call_operand.<no memory space> [shape: f32[1,1], index: 14, kind: input, shape index: {}]   ;;  %s3422_s15 = inlined_call_operand.vmem [shape: bf16[16,21], index: 15, kind: input, shape index: {}]   ;;  %s3423_s16 = inlined_call_operand.vmem [shape: f32[1,21], index: 16, kind: input, shape index: {}]   ;;  %s3424_s17 = inlined_call_operand.vmem [shape: bf16[16,128], index: 17, kind: input, shape index: {}]   ;;  %s3425_s18 = inlined_call_operand.vmem [shape: f32[1,128], index: 18, kind: input, shape index: {}]   ;;  %s3426_s19 = inlined_call_operand.vmem [shape: f32[1,128], index: 19, kind: input, shape index: {}]   ;;  %s3427_s20 = inlined_call_operand.vmem [shape: bf16[128,64], index: 20, kind: input, shape index: {}]   ;;  %s3428_s21 = inlined_call_operand.vmem [shape: f32[1,64], index: 21, kind: input, shape index: {}]   ;;  %s3429_s22 = inlined_call_operand.vmem [shape: bf16[64,2], index: 22, kind: input, shape index: {}]   ;;  %s3430_s23 = inlined_call_operand.vmem [shape: f32[1,2], index: 23, kind: input, shape index: {}]   ;;  %s3431_s24 = inlined_call_operand.vmem [shape: f32[6,2], index: 24, kind: input, shape index: {}]   ;;  %s3432_s25 = inlined_call_operand.vmem [shape: f32[64,24], index: 25, kind: output, shape index: {}]  }
   0x1   :  { %3441 = sst [smem:[#allocation3_spill]] %s3407_s0  ;;  %v30_v0 = vstv %s3421_s14 }
   0x2   :  { %3442 = sst [smem:[#allocation4_spill]] %s3408_s1  ;;  %31 = vst [vmem:[#allocation2] sm:$0x1] %v30_v0 }
   0x3   :  { %3443 = sst [smem:[#allocation5_spill]] %s3409_s2 }
   0x4   :  { %3444 = sst [smem:[#allocation6_spill]] %s3410_s3 }
   0x5   :  { %3445 = sst [smem:[#allocation7_spill]] %s3411_s4 }
   0x6   :  { %3446 = sst [smem:[#allocation8_spill]] %s3412_s5 }
   0x7   :  { %3447 = sst [smem:[#allocation9_spill]] %s3413_s6  ;;  %s2993_s6 = smov 0  }
   0x8   :  { %3448 = sst [smem:[#allocation10_spill]] %s3414_s7 }
   0x9   :  { %3449 = sst [smem:[#allocation11_spill]] %s3415_s8 }
   0xa   :  { %3450 = sst [smem:[#allocation12_spill]] %s3416_s9 }
   0xb LB: > { %s2999_s30 = sadd.s32 4294967295, %s2853_s6   ;;  %p2496_p0 = scmp.ge.s32.totalorder %s2853_s6, 1  ;;  %s2853_s6 = sphi %s2993_s6, %s37_s6  }
   0xc   : > { %p688_p1 = scmp.lt.s32.totalorder %s2853_s6, 3 }
   0xe   : > { %p689_p2 = pnand %p2496_p0, %p688_p1 }
   0xf   : > { %s3451_s14 = sld [smem:[#allocation4_spill]] (!%p689_p2)  ;;  %p755_p3 = scmp.lt.s32.totalorder (!%p689_p2), %s2999_s30, 1 }
  0x10   : > { %692 = sbr.rel (%p689_p2) target bundleno = 2324 (0x914), region = 120  ;;  %s3452_s0 = sld [smem:[#allocation3_spill]] (!%p689_p2) }
  0x11   : > { %s3453_s1 = sld [smem:[#allocation5_spill]] (!%p689_p2)  ;;  %s2510_s9 = sshll.u32 (!%p689_p2), %s2999_s30, 5 }
  0x12   : > { %s935_s5 = sshra.s32 (!%p689_p2), %s2510_s9, 3  ;;  %s3456_s9 = sld [smem:[#allocation6_spill]] (!%p689_p2) }
  0x13   : > { %s3457_s26 = sld [smem:[#allocation10_spill]] (!%p689_p2)  ;;  %s3462_s2 = smov (!%p689_p2), 16  }
  0x14   : > { %s3459_s3 = sld [smem:[#allocation12_spill]] (!%p689_p2) }
  0x15   : > { %v2772_v1 = vld [vmem:[%s3451_s14 + $0x18] sm:$0xff]   ;;  %v2773_v2 = vld [vmem:[%s3451_s14 + $0x10] sm:$0xff]   ;;  %s756_s8 = scalar_select %p755_p3, %s2999_s30, 1  ;;  %v2774_v3 = vld [vmem:[%s3451_s14 + $0x8] sm:$0xff]   ;;  %vm801_vm0 = vcmask 523264   ;;  %v2856_v15 = vmov 16  }
  0x16   : > { %2639 = vmatprep.subr.bf16.mxu0 %v2772_v1  ;;  %v2775_v4 = vld [vmem:[%s3451_s14] sm:$0xff]   ;;  %2767 = vset.pattern.permute.xlu1 %v2856_v15  ;;  %vm874_vm1 = vcmask 130048   ;;  %vm1066_vm2 = vcmask 261120   ;;  %vm1557_vm14 = vcmask 171008  }
  0x17   : > { %2640 = vmatpush3.bf16.msra.mxu0 %v2772_v1  ;;  %s2497_s28 = sshll.u32 %s756_s8, 3  ;;  %v2776_v8 = vld [vmem:[%s3453_s1] sm:$0xff]   ;;  %s2855_s8 = smov 127   ;;  %2766 = vset.pattern.permute.xlu0 %v2856_v15 }
  0x18   : > { %2641 = vmatprep.subr.bf16.mxu0 %v2773_v2  ;;  %s758_s29 = scalar_lea.vmem %s3452_s0, %s2497_s28  ;;  %2651 = vmatprep.subr.bf16.mxu1 %v2776_v8  ;;  %s3454_s28 = sld [smem:[#allocation8_spill]] }
  0x19   : > { %v766_v5 = vld [vmem:[%s758_s29] sm:$0xff]  ;;  %2652 = vmatpush3.bf16.msra.mxu1 %v2776_v8  ;;  %s2511_s0 = sshll.u32 %s935_s5, 2  ;;  %s3455_s1 = sld [smem:[#allocation7_spill]] }
  0x1a   : > { %v767_v6 = vunpack.c.l.s8.bf16 %v766_v5  ;;  %v768_v7 = vunpack.c.h.s8.bf16 %v766_v5  ;;  %s3036_s7 = scalar_lea.vmem %s3451_s14, %s2511_s0  ;;  %s3437_s0 = smov 15  }
  0x1b   : > { %2642 = vmatpush3.bf16.msra.mxu0 %v2773_v2  ;;  %v3039_v21 = vld [vmem:[%s3036_s7] sm:$0xff]   ;;  %v3042_v22 = vld [vmem:[%s3036_s7 + $0x8] sm:$0xff]   ;;  %s3439_s29 = smov 16  }
  0x1c   : > { %2643 = vmatprep.subr.bf16.mxu0 %v2774_v3  ;;  %2647 = vmatprep.mubr.msk.bf16.mxu0 %vm801_vm0, %v767_v6 }
  0x1e   : > { %v2777_v20 = vld [vmem:[%s3454_s28] sm:$0xff]  }
  0x1f   : > { %2644 = vmatpush3.bf16.msra.mxu0 %v2774_v3  ;;  %2657 = vmatprep.subr.bf16.mxu1 %v2777_v20  ;;  %v2780_v23 = vld [vmem:[%s3455_s1 + $0x8] sm:$0xff]   ;;  %v2781_v24 = vld [vmem:[%s3455_s1] sm:$0xff]  }
  0x20   : > { %2645 = vmatprep.subr.bf16.mxu0 %v2775_v4 }
  0x23   : > { %2646 = vmatpush3.bf16.msra.mxu0 %v2775_v4 }
  0x26   : > { %2648 = vmatmul.mubr.msk.bf16.vlgmr.msra.gmra.mxu0 %vm801_vm0, %v768_v7 }
  0xe6   : > { %v2649_v9 = vpop.f32.mrf.mxu0 }
  0xe7   : > { %v949_v10 = vmax.f32 %v2649_v9, 1e-12 }
  0xe8   : > { %v842_v11 = vpop.f32.mrf.mxu0 }
  0xe9   : > { %959 = vrot.lane.b32.xlu1 %v949_v10, %s2855_s8  ;;  %v947_v12 = vmax.f32 %v842_v11, 1e-12 }
  0xea   : > { %v2650_v13 = vpop.f32.mrf.mxu0 }
  0xeb   : > { %v950_v14 = vmax.f32 %v2650_v13, 1e-12  ;;  %955 = vrot.lane.b32.xlu0 %v947_v12, %s2855_s8  ;;  %v858_v19 = vpack.c.bf16 %v2650_v13, %v2649_v9 }
  0xec   : > { %v845_v16 = vpop.f32.mrf.mxu0 }
  0xed   : > { %v948_v17 = vmax.f32 %v845_v16, 1e-12  ;;  %961 = vrot.lane.b32.xlu1 %v950_v14, %s2855_s8  ;;  %v857_v18 = vpack.c.bf16 %v845_v16, %v842_v11 }
  0xef   : > { %957 = vrot.lane.b32.xlu0 %v948_v17, %s2855_s8  ;;  %2653 = vmatprep.mubr.msk.bf16.mxu1 %vm874_vm1, %v857_v18 }
  0xf0   : > { %2654 = vmatmul.mubr.msk.bf16.vlgmr.msra.gmra.mxu1 %vm874_vm1, %v858_v19 }
  0xf1   : > { %2658 = vmatpush3.bf16.msra.mxu1 %v2777_v20  ;;  %2659 = vmatprep.mubr.msk.bf16.mxu1 %vm874_vm1, %v3039_v21 }
  0xf2   : > { %2663 = vmatprep.subr.bf16.mxu1 %v2780_v23 }
  0xf8   : > { %2660 = vmatmul.mubr.msk.bf16.vlgmr.msra.gmra.mxu1 %vm874_vm1, %v3042_v22 }
  0xf9   : > { %2664 = vmatpush3.bf16.msra.mxu1 %v2780_v23 }
  0xfa   : > { %2665 = vmatprep.subr.bf16.mxu1 %v2781_v24 }
  0xfd   : > { %2666 = vmatpush3.bf16.msra.mxu1 %v2781_v24 }
 0x15b   : > { %v960_v25 = vpop.permute.xlu1 %959 }
 0x15c   : > { %2805 = vrcp.f32 %v960_v25 }
 0x15d   : > { %v956_v26 = vpop.permute.xlu0 %955 }
 0x15e   : > { %2807 = vrcp.f32 %v956_v26 }
 0x15f   : > { %v962_v27 = vpop.permute.xlu1 %961 }
 0x160   : > { %2809 = vrcp.f32 %v962_v27 }
 0x161   : > { %v958_v28 = vpop.permute.xlu0 %957 }
 0x162   : > { %2811 = vrcp.f32 %v958_v28 }
 0x169   : > { %v2806_v29 = vpop.eup %2805 }
 0x16a   : > { %v972_v30 = vmul.f32 %v2806_v29, %v2649_v9 }
 0x16b   : > { %v2808_v31 = vpop.eup %2807 }
 0x16c   : > { %v968_v32 = vmul.f32 %v2808_v31, %v842_v11  ;;  %v2576_v33 = vadd.f32 -0.5, %v972_v30  ;;  %v2581_v36 = vadd.f32 -0.75, %v972_v30  ;;  %v2571_v37 = vadd.f32 -0.25, %v972_v30 }
 0x16d   : > { %v2810_v34 = vpop.eup %2809  ;;  %v1604_v41 = vmul.f32 20.0, %v972_v30 }
 0x16e   : > { %1741 = vperm.xlu0 %2766, %v968_v32   ;;  %v974_v38 = vmul.f32 %v2810_v34, %v2650_v13  ;;  %v2188_v40 = vmax.f32 %v2576_v33, 0.0  ;;  %v2233_v42 = vmax.f32 %v2581_v36, 0.0  ;;  %v2569_v43 = vadd.f32 -0.25, %v968_v32 }
 0x16f   : > { %v2812_v35 = vpop.eup %2811  ;;  %v2143_v45 = vmax.f32 %v2571_v37, 0.0  ;;  %v1608_v47 = vfloor.f32 %v1604_v41  ;;  %v2574_v50 = vadd.f32 -0.5, %v968_v32  ;;  %v2579_v57 = vadd.f32 -0.75, %v968_v32 }
 0x170   : > { %v3054_v39 = vmul.f32 %v2812_v35, %v845_v16  ;;  %v2192_v44 = vmul.f32 %v2188_v40, %v2188_v40  ;;  %v2572_v46 = vadd.f32 -0.25, %v974_v38  ;;  %v2237_v48 = vmul.f32 %v2233_v42, %v2233_v42 }
 0x171   : > { %v2141_v49 = vmax.f32 %v2569_v43, 0.0  ;;  %v2147_v51 = vmul.f32 %v2143_v45, %v2143_v45  ;;  %v2577_v53 = vadd.f32 -0.5, %v974_v38  ;;  %v1612_v54 = vmax.f32 %v1608_v47, 0.0 }
 0x172   : > { %1756 = vperm.xlu0 %2766, %v974_v38   ;;  %1746 = vperm.xlu1 %2767, %v3054_v39   ;;  %v2144_v52 = vmax.f32 %v2572_v46, 0.0  ;;  %v2186_v56 = vmax.f32 %v2574_v50, 0.0  ;;  %v2570_v58 = vadd.f32 -0.25, %v3054_v39  ;;  %v1605_v62 = vmul.f32 20.0, %v974_v38 }
 0x173   : > { %v2145_v55 = vmul.f32 %v2141_v49, %v2141_v49  ;;  %v2189_v60 = vmax.f32 %v2577_v53, 0.0  ;;  %v1616_v61 = vmin.f32 %v1612_v54, 19.0  ;;  %v2231_v0 = vmax.f32 %v2579_v57, 0.0 }
 0x174   : > { %v2148_v59 = vmul.f32 %v2144_v52, %v2144_v52  ;;  %v2190_v63 = vmul.f32 %v2186_v56, %v2186_v56  ;;  %v2582_v1 = vadd.f32 -0.75, %v974_v38  ;;  %v2142_v3 = vmax.f32 %v2570_v58, 0.0 }
 0x175   : > { %v2193_v2 = vmul.f32 %v2189_v60, %v2189_v60  ;;  %v2749_v4 = vtrunc.f32 %v1616_v61  ;;  %v1609_v5 = vfloor.f32 %v1605_v62  ;;  %v2235_v6 = vmul.f32 %v2231_v0, %v2231_v0 }
 0x176   : > { %2207 = vperm.xlu0 %2766, %v2192_v44   ;;  %1751 = vperm.xlu1 %2767, %v972_v30   ;;  %v2146_v7 = vmul.f32 %v2142_v3, %v2142_v3  ;;  %v2234_v8 = vmax.f32 %v2582_v1, 0.0  ;;  %v2575_v11 = vadd.f32 -0.5, %v3054_v39  ;;  %v1602_v16 = vmul.f32 20.0, %v968_v32  ;;  %v2506_v44 = vld [vmem:[%s3456_s9] ss:$0 sm:$0xff]  ;;  %s3458_s9 = sld [smem:[#allocation9_spill]] }
 0x177   : > { %v2750_v9 = vcvt.f32.s32 %v2749_v4  ;;  %v1613_v10 = vmax.f32 %v1609_v5, 0.0  ;;  %v1620_v17 = vsub.f32 %v1604_v41, %v1616_v61  ;;  %v2580_v20 = vadd.f32 -0.75, %v3054_v39 }
 0x178   : > { %v2238_v12 = vmul.f32 %v2234_v8, %v2234_v8  ;;  %v2187_v19 = vmax.f32 %v2575_v11, 0.0  ;;  %v1606_v23 = vfloor.f32 %v1602_v16  ;;  %v1603_v32 = vmul.f32 20.0, %v3054_v39 }
 0x179   : > { %v1674_v13 = vadd.s32 1, %v2750_v9  ;;  %v1617_v14 = vmin.f32 %v1613_v10, 19.0  ;;  %v2232_v25 = vmax.f32 %v2580_v20, 0.0  ;;  %v1646_v30 = vsub.f32 1.0, %v1620_v17 }
 0x17a   : > { %2252 = vperm.xlu0 %2766, %v2237_v48   ;;  %2162 = vperm.xlu1 %2767, %v2147_v51   ;;  %v2191_v24 = vmul.f32 %v2187_v19, %v2187_v19  ;;  %v1610_v26 = vmax.f32 %v1606_v23, 0.0  ;;  %v1607_v34 = vfloor.f32 %v1603_v32 }
 0x17b   : > { %v1621_v18 = vsub.f32 %v1605_v62, %v1617_v14  ;;  %v2236_v27 = vmul.f32 %v2232_v25, %v2232_v25  ;;  %v2751_v42 = vtrunc.f32 %v1617_v14  ;;  %v2568_v14 = vld [vmem:[%s3431_s24] ss:$0 sm:$0xff]  ;;  %v2578_v25 = vld [vmem:[%s3431_s24 + $0x4] ss:$0 sm:$0xff] }
 0x17c   : > { %v1614_v28 = vmin.f32 %v1610_v26, 19.0  ;;  %v1611_v36 = vmax.f32 %v1607_v34, 0.0 }
 0x17d   : > { %v2752_v45 = vcvt.f32.s32 %v2751_v42  ;;  %v1647_v52 = vsub.f32 1.0, %v1621_v18 }
 0x17e   : > { %2167 = vperm.xlu0 %2766, %v2148_v59   ;;  %2152 = vperm.xlu1 %2767, %v2145_v55   ;;  %v1618_v29 = vsub.f32 %v1602_v16, %v1614_v28  ;;  %v2745_v31 = vtrunc.f32 %v1614_v28  ;;  %v1615_v38 = vmin.f32 %v1611_v36, 19.0  ;;  %v2583_v28 = vld [vmem:[%s3431_s24 + $0x5] ss:$0 sm:$0xff] }
 0x17f   : > { %v1675_v61 = vadd.s32 1, %v2752_v45 }
 0x180   : > { %v2746_v33 = vcvt.f32.s32 %v2745_v31  ;;  %v1644_v35 = vsub.f32 1.0, %v1618_v29  ;;  %v1619_v41 = vsub.f32 %v1603_v32, %v1615_v38  ;;  %v2747_v53 = vtrunc.f32 %v1615_v38 }
 0x182   : > { %2212 = vperm.xlu0 %2766, %v2193_v2   ;;  %2197 = vperm.xlu1 %2767, %v2190_v63   ;;  %v1672_v37 = vadd.s32 1, %v2746_v33  ;;  %v2748_v59 = vcvt.f32.s32 %v2747_v53  ;;  %v1645_v60 = vsub.f32 1.0, %v1619_v41  ;;  %v1626_v63 = vlaneseq  ;;  %v2566_v2 = vld [vmem:[%s3431_s24 + $0x2] ss:$0 sm:$0xff] }
 0x184   : > { %v1673_v62 = vadd.s32 1, %v2748_v59  ;;  %v3068_v1 = vand.u32 127, %v1626_v63 }
 0x186   : > { %2242 = vperm.xlu1 %2767, %v2235_v6   ;;  %2157 = vperm.xlu0 %2766, %v2146_v7   ;;  %vm2400_vm3 = vcmp.eq.s32.totalorder %v3068_v1, 4  ;;  %v2567_v6 = vld [vmem:[%s3431_s24 + $0x1] ss:$0 sm:$0xff] }
 0x18a   : > { %2257 = vperm.xlu1 %2767, %v2238_v12   ;;  %1683 = vperm.xlu0 %2766, %v1674_v13  }
 0x18e   : > { %1704 = vperm.xlu1 %2767, %v1620_v17   ;;  %1709 = vperm.xlu0 %2766, %v1621_v18   ;;  %v2573_v18 = vld [vmem:[%s3431_s24 + $0x3] ss:$0 sm:$0xff] }
 0x192   : > { %2202 = vperm.xlu1 %2767, %v2191_v24  }
 0x196   : > { %2247 = vperm.xlu1 %2767, %v2236_v27  }
 0x19a   : > { %1694 = vperm.xlu1 %2767, %v1618_v29  }
 0x19e   : > { %1635 = vperm.xlu1 %2767, %v2750_v9  }
 0x1a2   : > { %1660 = vperm.xlu1 %2767, %v1646_v30  }
 0x1a6   : > { %1629 = vperm.xlu1 %2767, %v2746_v33  }
 0x1aa   : > { %1650 = vperm.xlu1 %2767, %v1644_v35  }
 0x1ae   : > { %1677 = vperm.xlu1 %2767, %v1672_v37  }
 0x1b0   : > { %v2655_v40 = vpop.f32.mrf.mxu1 }
 0x1b1   : > { %v924_v48 = vadd.f32 %v2655_v40, %v2506_v44 }
 0x1b2   : > { %1699 = vperm.xlu1 %2767, %v1619_v41   ;;  %v915_v43 = vpop.f32.mrf.mxu1 }
 0x1b3   : > { %v916_v46 = vadd.f32 %v2506_v44, %v915_v43  ;;  %v932_v56 = vmax.f32 %v924_v48, 0.0 }
 0x1b4   : > { %v2656_v39 = vpop.f32.mrf.mxu1 }
 0x1b5   : > { %v927_v47 = vadd.f32 %v2656_v39, %v2506_v44  ;;  %v930_v54 = vmax.f32 %v916_v46, 0.0 }
 0x1b6   : > { %1638 = vperm.xlu1 %2767, %v2752_v45   ;;  %v918_v49 = vpop.f32.mrf.mxu1 }
 0x1b7   : > { %v919_v50 = vadd.f32 %v2506_v44, %v918_v49  ;;  %v933_v51 = vmax.f32 %v927_v47, 0.0 }
 0x1b9   : > { %v931_v55 = vmax.f32 %v919_v50, 0.0  ;;  %v976_v58 = vpack.c.bf16 %v933_v51, %v932_v56 }
 0x1ba   : > { %1665 = vperm.xlu1 %2767, %v1647_v52  }
 0x1bb   : > { %v975_v57 = vpack.c.bf16 %v931_v55, %v930_v54 }
 0x1bd   : > { %2667 = vmatprep.mubr.msk.bf16.mxu1 %vm1066_vm2, %v975_v57 }
 0x1be   : > { %1632 = vperm.xlu1 %2767, %v2748_v59   ;;  %2668 = vmatmul.mubr.msk.bf16.vlgmr.msra.gmra.mxu1 %vm1066_vm2, %v976_v58 }
 0x1c2   : > { %1655 = vperm.xlu1 %2767, %v1645_v60  }
 0x1c6   : > { %1686 = vperm.xlu1 %2767, %v1675_v61   ;;  %v2782_v61 = vld [vmem:[%s3457_s26 + $0x8] sm:$0xff]  }
 0x1c7   : > { %2671 = vmatprep.subr.bf16.mxu1 %v2782_v61 }
 0x1c8   : > { %2672 = vmatpush3.bf16.msra.mxu1 %v2782_v61 }
 0x1ca   : > { %1680 = vperm.xlu1 %2767, %v1673_v62   ;;  %v2783_v62 = vld [vmem:[%s3457_s26] sm:$0xff]  }
 0x1cb   : > { %2673 = vmatprep.subr.bf16.mxu1 %v2783_v62 }
 0x1cc   : > { %2674 = vmatpush3.bf16.msra.mxu1 %v2783_v62 }
 0x1e9   : > { %v3066_v0 = vpop.permute.xlu0 %1741 }
 0x1ea   : > { %v2111_v11 = vmul.f32 %v2566_v2, %v3066_v0 }
 0x1ec   : > { %v2120_v23 = vadd.f32 %v2567_v6, %v2111_v11 }
 0x1ed   : > { %v3073_v3 = vpop.permute.xlu1 %1746  ;;  %v3075_v4 = vpop.permute.xlu0 %1756 }
 0x1ee   : > { %v2114_v5 = vmul.f32 %v2566_v2, %v3075_v4  ;;  %v3085_v7 = vsel %vm2400_vm3, %v3075_v4, 0.0  ;;  %v2124_v31 = vmul.f32 %v2120_v23, %v3066_v0  ;;  %v2112_v49 = vmul.f32 %v2566_v2, %v3073_v3 }
 0x1f0   : > { %v2123_v8 = vadd.f32 %v2567_v6, %v2114_v5  ;;  %v2133_v43 = vadd.f32 %v2568_v14, %v2124_v31  ;;  %v2121_v54 = vadd.f32 %v2567_v6, %v2112_v49 }
 0x1f1   : > { %v3087_v9 = vpop.permute.xlu1 %1751  ;;  %v2208_v10 = vpop.permute.xlu0 %2207 }
 0x1f2   : > { %v2127_v12 = vmul.f32 %v2123_v8, %v3075_v4  ;;  %v2113_v13 = vmul.f32 %v2566_v2, %v3087_v9  ;;  %v2221_v32 = vmul.f32 %v2578_v25, %v2208_v10  ;;  %v2125_v59 = vmul.f32 %v2121_v54, %v3073_v3 }
 0x1f4   : > { %v2122_v16 = vadd.f32 %v2567_v6, %v2113_v13  ;;  %v2136_v17 = vadd.f32 %v2568_v14, %v2127_v12  ;;  %v2134_v5 = vadd.f32 %v2568_v14, %v2125_v59 }
 0x1f5   : > { %v2163_v19 = vpop.permute.xlu1 %2162  ;;  %v2253_v20 = vpop.permute.xlu0 %2252 }
 0x1f6   : > { %v2126_v24 = vmul.f32 %v2122_v16, %v3087_v9  ;;  %v2176_v27 = vmul.f32 %v2573_v18, %v2163_v19  ;;  %v2266_v36 = vmul.f32 %v2583_v28, %v2253_v20 }
 0x1f8   : > { %v2135_v26 = vadd.f32 %v2568_v14, %v2126_v24 }
 0x1f9   : > { %v2153_v29 = vpop.permute.xlu1 %2152  ;;  %v2168_v30 = vpop.permute.xlu0 %2167 }
 0x1fa   : > { %v2180_v33 = vadd.f32 %v2176_v27, %v2135_v26  ;;  %v2177_v34 = vmul.f32 %v2573_v18, %v2168_v30  ;;  %v2174_v37 = vmul.f32 %v2573_v18, %v2153_v29 }
 0x1fc   : > { %v2225_v35 = vadd.f32 %v2221_v32, %v2180_v33  ;;  %v2181_v38 = vadd.f32 %v2177_v34, %v2136_v17  ;;  %v2178_v45 = vadd.f32 %v2174_v37, %v2133_v43  ;;  %v3139_v43 = vunpack.c.l.bf16 %v3042_v22 }
 0x1fd   : > { %v2198_v40 = vpop.permute.xlu1 %2197  ;;  %v2213_v41 = vpop.permute.xlu0 %2212 }
 0x1fe   : > { %v2270_v42 = vadd.f32 %v2266_v36, %v2225_v35  ;;  %v2219_v44 = vmul.f32 %v2578_v25, %v2198_v40  ;;  %v2222_v39 = vmul.f32 %v2578_v25, %v2213_v41  ;;  %vm2274_vm12 = vcmp.eq.f32.partialorder %v3139_v43, 1.0 }
 0x200   : > { %v2226_v46 = vadd.f32 %v2222_v39, %v2181_v38  ;;  %2296 = vrot.lane.b32.xlu0 %v2270_v42, %s3437_s0  ;;  %2284 = vrot.lane.b32.xlu1 %v2270_v42, %s3439_s29  ;;  %v2223_v50 = vadd.f32 %v2219_v44, %v2178_v45  ;;  %v2661_v44 = vpop.f32.mrf.mxu1 }
 0x201   : > { %v2243_v47 = vpop.permute.xlu1 %2242  ;;  %v2158_v48 = vpop.permute.xlu0 %2157 }
 0x202   : > { %v2264_v51 = vmul.f32 %v2583_v28, %v2243_v47  ;;  %v2175_v63 = vmul.f32 %v2573_v18, %v2158_v48  ;;  %v1039_v47 = vpop.f32.mrf.mxu1 }
 0x204   : > { %v2268_v52 = vadd.f32 %v2264_v51, %v2223_v50  ;;  %v2179_v8 = vadd.f32 %v2175_v63, %v2134_v5  ;;  %v2662_v49 = vpop.f32.mrf.mxu1 }
 0x205   : > { %v2258_v53 = vpop.permute.xlu1 %2257  ;;  %v1684_v56 = vpop.permute.xlu0 %1683 }
 0x206   : > { %v2267_v55 = vmul.f32 %v2583_v28, %v2258_v53  ;;  %2292 = vrot.lane.b32.xlu0 %v2268_v52, %s3437_s0  ;;  %2280 = vrot.lane.b32.xlu1 %v2268_v52, %s3439_s29  ;;  %vm1690_vm4 = vcmp.eq.s32.totalorder %v3068_v1, %v1684_v56  ;;  %v1042_v22 = vpop.f32.mrf.mxu1 }
 0x208   : > { %v3111_v57 = vadd.f32 %v2267_v55, %v2226_v46  ;;  %v3143_v46 = vunpack.c.l.bf16 %v3039_v21  ;;  %v2521_v21 = vld [vmem:[%s3458_s9] ss:$0 sm:$0xff]  ;;  %s3460_s9 = sld [smem:[#allocation11_spill]] }
 0x209   : > { %v1705_v58 = vpop.permute.xlu1 %1704  ;;  %v1710_v36 = vpop.permute.xlu0 %1709 }
 0x20a   : > { %v1714_v60 = vsel %vm1690_vm4, %v1705_v58, 0.0  ;;  %vm2272_vm13 = vcmp.eq.f32.partialorder %v3143_v46, 1.0 }
 0x20d   : > { %v2203_v2 = vpop.permute.xlu1 %2202 }
 0x20e   : > { %v2220_v6 = vmul.f32 %v2578_v25, %v2203_v2 }
 0x210   : > { %v2224_v11 = vadd.f32 %v2220_v6, %v2179_v8 }
 0x211   : > { %v2248_v10 = vpop.permute.xlu1 %2247 }
 0x212   : > { %v2265_v12 = vmul.f32 %v2583_v28, %v2248_v10 }
 0x214   : > { %v2269_v13 = vadd.f32 %v2265_v12, %v2224_v11 }
 0x215   : > { %v1695_v16 = vpop.permute.xlu1 %1694 }
 0x216   : > { %2294 = vrot.lane.b32.xlu0 %v2269_v13, %s3437_s0  ;;  %2282 = vrot.lane.b32.xlu1 %v2269_v13, %s3439_s29  ;;  %s3461_s0 = smov 15  }
 0x219   : > { %v1636_v17 = vpop.permute.xlu1 %1635 }
 0x21a   : > { %vm1642_vm5 = vcmp.eq.s32.totalorder %v3068_v1, %v1636_v17  ;;  %v2785_v17 = vld [vmem:[%s3459_s3] sm:$0xff]  }
 0x21d   : > { %v1661_v18 = vpop.permute.xlu1 %1660 }
 0x21e   : > { %v1670_v19 = vsel %vm1642_vm5, %v1661_v18, 0.0 }
 0x21f   : > { %v3124_v14 = vadd.f32 %v1714_v60, %v1670_v19 }
 0x221   : > { %v1630_v20 = vpop.permute.xlu1 %1629 }
 0x222   : > { %vm1640_vm6 = vcmp.eq.s32.totalorder %v3068_v1, %v1630_v20  ;;  %v2522_v20 = vld [vmem:[%s3460_s9] ss:$0 sm:$0xff] }
 0x225   : > { %v1651_v23 = vpop.permute.xlu1 %1650 }
 0x226   : > { %v1668_v24 = vsel %vm1640_vm6, %v1651_v23, 0.0 }
 0x229   : > { %v1678_v25 = vpop.permute.xlu1 %1677 }
 0x22a   : > { %vm1688_vm7 = vcmp.eq.s32.totalorder %v3068_v1, %v1678_v25 }
 0x22b   : > { %v1712_v26 = vsel %vm1688_vm7, %v1695_v16, 0.0  ;;  %v2784_v16 = vld [vmem:[%s3459_s3 + $0x8] sm:$0xff]   ;;  %vm2308_vm7 = vcmp.eq.s32.totalorder %v3068_v1, 0 }
 0x22c   : > { %v3128_v27 = vadd.f32 %v1712_v26, %v1668_v24  ;;  %2679 = vmatprep.subr.bf16.mxu1 %v2784_v16 }
 0x22d   : > { %v1700_v28 = vpop.permute.xlu1 %1699 }
 0x231   : > { %v1639_v29 = vpop.permute.xlu1 %1638 }
 0x232   : > { %vm1643_vm8 = vcmp.eq.s32.totalorder %v3068_v1, %v1639_v29 }
 0x235   : > { %v1666_v30 = vpop.permute.xlu1 %1665 }
 0x236   : > { %v1671_v31 = vsel %vm1643_vm8, %v1666_v30, 0.0  ;;  %vm2333_vm8 = vcmp.eq.s32.totalorder %v3068_v1, 1 }
 0x239   : > { %v1633_v32 = vpop.permute.xlu1 %1632 }
 0x23a   : > { %vm1641_vm9 = vcmp.eq.s32.totalorder %v3068_v1, %v1633_v32 }
 0x23d   : > { %v1656_v33 = vpop.permute.xlu1 %1655 }
 0x23e   : > { %v1669_v34 = vsel %vm1641_vm9, %v1656_v33, 0.0  ;;  %vm2342_vm9 = vcmp.eq.s32.totalorder %v3068_v1, 2 }
 0x241   : > { %v1687_v35 = vpop.permute.xlu1 %1686 }
 0x242   : > { %vm1691_vm10 = vcmp.eq.s32.totalorder %v3068_v1, %v1687_v35 }
 0x243   : > { %v1715_v37 = vsel %vm1691_vm10, %v1710_v36, 0.0  ;;  %v2786_v36 = vld [vmem:[%s3418_s11] sm:$0xff]   ;;  %vm2371_vm10 = vcmp.eq.s32.totalorder %v3068_v1, 3 }
 0x244   : > { %v3133_v38 = vadd.f32 %v1715_v37, %v1671_v31  ;;  %2687 = vmatprep.subr.bf16.mxu0 %v2786_v36  ;;  %v2787_v37 = vld [vmem:[%s3422_s15] sm:$0xff]  }
 0x245   : > { %v1681_v40 = vpop.permute.xlu1 %1680  ;;  %2688 = vmatpush3.bf16.msra.mxu0 %v2786_v36  ;;  %v2796_v36 = vld [vmem:[%s3427_s20 + $0x10] sm:$0xff]  }
 0x246   : > { %vm1689_vm11 = vcmp.eq.s32.totalorder %v3068_v1, %v1681_v40  ;;  %2701 = vmatprep.subr.bf16.mxu0 %v2787_v37 }
 0x247   : > { %v1713_v41 = vsel %vm1689_vm11, %v1700_v28, 0.0  ;;  %vm2429_vm11 = vcmask 195584  }
 0x248   : > { %v3136_v42 = vadd.f32 %v1713_v41, %v1669_v34 }
 0x272   : > { %v2285_v39 = vpop.permute.xlu1 %2284  ;;  %v2297_v45 = vpop.permute.xlu0 %2296 }
 0x273   : > { %v3145_v48 = vsel %vm2274_vm12, %v2285_v39, %v2297_v45  ;;  %v2527_v39 = vld [vmem:[%s3417_s10] ss:$0 sm:$0xff] }
 0x278   : > { %v2281_v50 = vpop.permute.xlu1 %2280  ;;  %v2293_v51 = vpop.permute.xlu0 %2292 }
 0x279   : > { %v3148_v52 = vsel %vm2272_vm13, %v2281_v50, %v2293_v51 }
 0x27e   : > { %v2669_v53 = vpop.f32.mrf.mxu1 }
 0x27f   : > { %v1116_v56 = vadd.f32 %v2669_v53, %v2661_v44 }
 0x280   : > { %v1107_v54 = vpop.f32.mrf.mxu1 }
 0x281   : > { %v1108_v55 = vadd.f32 %v1107_v54, %v1039_v47  ;;  %v1131_v2 = vadd.f32 %v2521_v21, %v1116_v56  ;;  %v2788_v54 = vld [vmem:[%s3420_s13 + $0x8] sm:$0xff]   ;;  %v2790_v56 = vld [vmem:[%s3424_s17] sm:$0xff]  }
 0x282   : > { %v2670_v58 = vpop.f32.mrf.mxu1 }
 0x283   : > { %v1119_v59 = vadd.f32 %v2670_v58, %v2662_v49  ;;  %v1129_v61 = vadd.f32 %v2521_v21, %v1108_v55  ;;  %v1135_v11 = vmax.f32 %v1131_v2, 0.0  ;;  %v2789_v55 = vld [vmem:[%s3420_s13] sm:$0xff]  }
 0x284   : > { %v1110_v60 = vpop.f32.mrf.mxu1 }
 0x285   : > { %v1132_v62 = vadd.f32 %v2521_v21, %v1119_v59  ;;  %v1111_v63 = vadd.f32 %v1110_v60, %v1042_v22  ;;  %v1133_v8 = vmax.f32 %v1129_v61, 0.0  ;;  %v2532_v59 = vld [vmem:[%s3419_s12] ss:$0 sm:$0xff] }
 0x287   : > { %v1130_v5 = vadd.f32 %v2521_v21, %v1111_v63  ;;  %v1136_v6 = vmax.f32 %v1132_v62, 0.0 }
 0x289   : > { %v1134_v10 = vmax.f32 %v1130_v5, 0.0  ;;  %v1138_v13 = vpack.c.bf16 %v1136_v6, %v1135_v11  ;;  %v2541_v5 = vld [vmem:[%s3423_s16] ss:$0 sm:$0xff] }
 0x28b   : > { %v1137_v12 = vpack.c.bf16 %v1134_v10, %v1133_v8 }
 0x28d   : > { %2675 = vmatprep.mubr.msk.bf16.mxu1 %vm1066_vm2, %v1137_v12 }
 0x28e   : > { %2676 = vmatmul.mubr.msk.bf16.vlgmr.msra.gmra.mxu1 %vm1066_vm2, %v1138_v13 }
 0x28f   : > { %2680 = vmatpush3.bf16.msra.mxu1 %v2784_v16 }
 0x290   : > { %2681 = vmatprep.subr.bf16.mxu1 %v2785_v17 }
 0x293   : > { %2682 = vmatpush3.bf16.msra.mxu1 %v2785_v17 }
 0x294   : > { %2693 = vmatprep.subr.bf16.mxu1 %v2788_v54 }
 0x34e   : > { %v2677_v18 = vpop.f32.mrf.mxu1 }
 0x34f   : > { %v1211_v26 = vadd.f32 %v2677_v18, %v2522_v20 }
 0x350   : > { %v1202_v19 = vpop.f32.mrf.mxu1 }
 0x351   : > { %v1203_v24 = vadd.f32 %v2522_v20, %v1202_v19  ;;  %v1219_v33 = vmax.f32 %v1211_v26, 0.0 }
 0x352   : > { %v2678_v23 = vpop.f32.mrf.mxu1 }
 0x353   : > { %v1214_v25 = vadd.f32 %v2678_v23, %v2522_v20  ;;  %v1217_v31 = vmax.f32 %v1203_v24, 0.0 }
 0x354   : > { %v1205_v28 = vpop.f32.mrf.mxu1 }
 0x355   : > { %v1206_v29 = vadd.f32 %v2522_v20, %v1205_v28  ;;  %v1220_v30 = vmax.f32 %v1214_v25, 0.0 }
 0x357   : > { %v1218_v32 = vmax.f32 %v1206_v29, 0.0  ;;  %v1222_v35 = vpack.c.bf16 %v1220_v30, %v1219_v33  ;;  %v2792_v33 = vld [vmem:[%s3427_s20 + $0x30] sm:$0xff]  }
 0x359   : > { %v1221_v34 = vpack.c.bf16 %v1218_v32, %v1217_v31  ;;  %v2791_v32 = vld [vmem:[%s3427_s20 + $0x38] sm:$0xff]  }
 0x35b   : > { %2683 = vmatprep.mubr.msk.bf16.mxu1 %vm1066_vm2, %v1221_v34  ;;  %v2793_v34 = vld [vmem:[%s3427_s20 + $0x28] sm:$0xff]  }
 0x35c   : > { %2684 = vmatmul.mubr.msk.bf16.vlgmr.msra.gmra.mxu1 %vm1066_vm2, %v1222_v35  ;;  %v2795_v35 = vld [vmem:[%s3427_s20 + $0x18] sm:$0xff]  }
 0x35d   : > { %2694 = vmatpush3.bf16.msra.mxu1 %v2788_v54 }
 0x35e   : > { %2695 = vmatprep.subr.bf16.mxu1 %v2789_v55 }
 0x361   : > { %2696 = vmatpush3.bf16.msra.mxu1 %v2789_v55 }
 0x362   : > { %2707 = vmatprep.subr.bf16.mxu1 %v2790_v56 }
 0x41c   : > { %v2685_v40 = vpop.f32.mrf.mxu1 }
 0x41d   : > { %v3181_v51 = vadd.f32 %v2685_v40, %v2527_v39  ;;  %v2798_v40 = vld [vmem:[%s3427_s20] sm:$0xff]  }
 0x41e   : > { %v1286_v41 = vpop.f32.mrf.mxu1 }
 0x41f   : > { %v3177_v49 = vadd.f32 %v2527_v39, %v1286_v41  ;;  %v3242_v41 = vpop.permute.xlu0 %2294 }
 0x420   : > { %v2686_v44 = vpop.f32.mrf.mxu1 }
 0x421   : > { %v3175_v45 = vadd.f32 %v2686_v44, %v2527_v39  ;;  %v3244_v44 = vpop.permute.xlu1 %2282 }
 0x422   : > { %v1289_v47 = vpop.f32.mrf.mxu1 }
 0x423   : > { %v3179_v50 = vadd.f32 %v2527_v39, %v1289_v47  ;;  %v1302_v53 = vpack.c.bf16 %v3175_v45, %v3181_v51 }
 0x425   : > { %v1301_v22 = vpack.c.bf16 %v3179_v50, %v3177_v49 }
 0x427   : > { %2689 = vmatprep.mubr.msk.bf16.mxu0 %vm874_vm1, %v1301_v22 }
 0x428   : > { %2690 = vmatmul.mubr.msk.bf16.vlgmr.msra.gmra.mxu0 %vm874_vm1, %v1302_v53 }
 0x429   : > { %2703 = vmatprep.mubr.msk.bf16.mxu0 %vm874_vm1, %v1301_v22  ;;  %2702 = vmatpush3.bf16.msra.mxu0 %v2787_v37  ;;  %v2797_v37 = vld [vmem:[%s3427_s20 + $0x8] sm:$0xff]  }
 0x42a   : > { %2713 = vmatprep.subr.bf16.mxu0 %v2791_v32 }
 0x430   : > { %2704 = vmatmul.mubr.msk.bf16.vlgmr.msra.gmra.mxu0 %vm874_vm1, %v1302_v53 }
 0x431   : > { %2714 = vmatpush3.bf16.msra.mxu0 %v2791_v32 }
 0x432   : > { %2715 = vmatprep.subr.bf16.mxu0 %v2792_v33 }
 0x435   : > { %2716 = vmatpush3.bf16.msra.mxu0 %v2792_v33 }
 0x436   : > { %2717 = vmatprep.subr.bf16.mxu0 %v2793_v34 }
 0x439   : > { %2718 = vmatpush3.bf16.msra.mxu0 %v2793_v34 }
 0x4e8   : > { %v2691_v58 = vpop.f32.mrf.mxu0 }
 0x4e9   : > { %v1367_v63 = vadd.f32 %v2691_v58, %v2532_v59 }
 0x4ea   : > { %v1358_v21 = vpop.f32.mrf.mxu0 }
 0x4eb   : > { %v1359_v61 = vadd.f32 %v2532_v59, %v1358_v21  ;;  %v1375_v16 = vmax.f32 %v1367_v63, 0.0 }
 0x4ec   : > { %v2692_v60 = vpop.f32.mrf.mxu0 }
 0x4ed   : > { %v1370_v62 = vadd.f32 %v2692_v60, %v2532_v59  ;;  %v1373_v11 = vmax.f32 %v1359_v61, 0.0 }
 0x4ee   : > { %v1361_v2 = vpop.f32.mrf.mxu0 }
 0x4ef   : > { %v1362_v6 = vadd.f32 %v2532_v59, %v1361_v2  ;;  %v1376_v8 = vmax.f32 %v1370_v62, 0.0 }
 0x4f0   : > { %v2705_v10 = vpop.f32.mrf.mxu0 }
 0x4f1   : > { %v1374_v12 = vmax.f32 %v1362_v6, 0.0  ;;  %v1551_v13 = vadd.f32 %v2705_v10, %v2541_v5  ;;  %v1378_v23 = vpack.c.bf16 %v1376_v8, %v1375_v16 }
 0x4f2   : > { %v1542_v17 = vpop.f32.mrf.mxu0 }
 0x4f3   : > { %v1377_v18 = vpack.c.bf16 %v1374_v12, %v1373_v11  ;;  %v1543_v19 = vadd.f32 %v2541_v5, %v1542_v17  ;;  %v1564_v20 = vsel %vm1557_vm14, %v1551_v13, -inf  ;;  %v2799_v12 = vld [vmem:[%s3429_s22 + $0x18] sm:$0xff]  }
 0x4f4   : > { %1565 = vmax.xlane.f32.xlu0 %v1564_v20  ;;  %v2706_v24 = vpop.f32.mrf.mxu0 }
 0x4f5   : > { %v1554_v25 = vadd.f32 %v2706_v24, %v2541_v5  ;;  %2697 = vmatprep.mubr.msk.bf16.mxu1 %vm1066_vm2, %v1377_v18  ;;  %v1558_v26 = vsel %vm1557_vm14, %v1543_v19, -inf }
 0x4f6   : > { %v1545_v28 = vpop.f32.mrf.mxu0  ;;  %1559 = vmax.xlane.f32.xlu1 %v1558_v26  ;;  %2698 = vmatmul.mubr.msk.bf16.vlgmr.msra.gmra.mxu1 %vm1066_vm2, %v1378_v23  ;;  %v2549_v26 = vld [vmem:[%s3426_s19] ss:$0 sm:$0xff] }
 0x4f7   : > { %v1546_v29 = vadd.f32 %v2541_v5, %v1545_v28  ;;  %2708 = vmatpush3.bf16.msra.mxu1 %v2790_v56  ;;  %2709 = vmatprep.mubr.msk.bf16.mxu1 %vm874_vm1, %v1301_v22  ;;  %v1567_v31 = vsel %vm1557_vm14, %v1554_v25, -inf }
 0x4f8   : > { %2733 = vmatprep.subr.bf16.mxu1 %v2799_v12 }
 0x4f9   : > { %v1561_v30 = vsel %vm1557_vm14, %v1546_v29, -inf }
 0x4fa   : > { %1562 = vmax.xlane.f32.xlu0 %v1561_v30  ;;  %1568 = vmax.xlane.f32.xlu1 %v1567_v31 }
 0x4fe   : > { %2710 = vmatmul.mubr.msk.bf16.vlgmr.msra.gmra.mxu1 %vm874_vm1, %v1302_v53 }
 0x4ff   : > { %2734 = vmatpush3.bf16.msra.mxu1 %v2799_v12 }
 0x50b   : > { %2286 = vrot.lane.b32.xlu1 %v3111_v57, %s3439_s29 }
 0x510   : > { %2298 = vrot.lane.b32.xlu0 %v3111_v57, %s3461_s0  ;;  %v2794_v57 = vld [vmem:[%s3427_s20 + $0x20] sm:$0xff]  }
 0x511   : > { %2719 = vmatprep.subr.bf16.mxu0 %v2794_v57 }
 0x512   : > { %2720 = vmatpush3.bf16.msra.mxu0 %v2794_v57 }
 0x513   : > { %2721 = vmatprep.subr.bf16.mxu0 %v2795_v35 }
 0x516   : > { %2722 = vmatpush3.bf16.msra.mxu0 %v2795_v35 }
 0x517   : > { %2723 = vmatprep.subr.bf16.mxu0 %v2796_v36 }
 0x51a   : > { %2724 = vmatpush3.bf16.msra.mxu0 %v2796_v36 }
 0x51b   : > { %2725 = vmatprep.subr.bf16.mxu0 %v2797_v37 }
 0x51e   : > { %2726 = vmatpush3.bf16.msra.mxu0 %v2797_v37 }
 0x51f   : > { %2727 = vmatprep.subr.bf16.mxu0 %v2798_v40 }
 0x522   : > { %2728 = vmatpush3.bf16.msra.mxu0 %v2798_v40 }
 0x57d   : > { %v1566_v39 = vpop.xlane.xlu0 %1565 }
 0x57e   : > { %v1572_v47 = vsub.f32 %v1551_v13, %v1566_v39 }
 0x57f   : > { %v1560_v22 = vpop.xlane.xlu1 %1559 }
 0x580   : > { %v1578_v53 = vmul.f32 1.442695, %v1572_v47  ;;  %v1570_v54 = vsub.f32 %v1543_v19, %v1560_v22  ;;  %v2545_v19 = vld [vmem:[%s3425_s18] ss:$0 sm:$0xff] }
 0x581   : > { %v1767_v20 = vmul.f32 %v2545_v19, %v3087_v9  ;;  %v1768_v30 = vmul.f32 %v2545_v19, %v3075_v4  ;;  %v1766_v34 = vmul.f32 %v2545_v19, %v3073_v3  ;;  %v2800_v4 = vld [vmem:[%s3429_s22 + $0x10] sm:$0xff]  }
 0x582   : > { %2813 = vpow2.f32 %v1578_v53  ;;  %v1574_v55 = vmul.f32 1.442695, %v1570_v54  ;;  %2735 = vmatprep.subr.bf16.mxu1 %v2800_v4 }
 0x583   : > { %v1563_v56 = vpop.xlane.xlu0 %1562  ;;  %v1569_v58 = vpop.xlane.xlu1 %1568  ;;  %2736 = vmatpush3.bf16.msra.mxu1 %v2800_v4 }
 0x584   : > { %2815 = vpow2.f32 %v1574_v55  ;;  %v1571_v21 = vsub.f32 %v1546_v29, %v1563_v56  ;;  %v1573_v59 = vsub.f32 %v1554_v25, %v1569_v58  ;;  %v1765_v25 = vmul.f32 %v2545_v19, %v3066_v0  ;;  %v2801_v56 = vld [vmem:[%s3429_s22 + $0x8] sm:$0xff]   ;;  %v2802_v58 = vld [vmem:[%s3429_s22] sm:$0xff]  }
 0x585   : > { %2737 = vmatprep.subr.bf16.mxu1 %v2801_v56 }
 0x586   : > { %v1576_v60 = vmul.f32 1.442695, %v1571_v21  ;;  %v1580_v61 = vmul.f32 1.442695, %v1573_v59 }
 0x587   : > { %2738 = vmatpush3.bf16.msra.mxu1 %v2801_v56 }
 0x588   : > { %2817 = vpow2.f32 %v1576_v60  ;;  %2739 = vmatprep.subr.bf16.mxu1 %v2802_v58  ;;  %v2550_v60 = vld [vmem:[%s3428_s21] ss:$0 sm:$0xff] }
 0x589   : > { %2819 = vpow2.f32 %v1580_v61 }
 0x58b   : > { %2740 = vmatpush3.bf16.msra.mxu1 %v2802_v58 }
 0x58f   : > { %v3246_v62 = vpop.eup %2813 }
 0x590   : > { %v1588_v63 = vsel %vm1557_vm14, %v3246_v62, 0.0 }
 0x591   : > { %v3250_v2 = vpop.eup %2815  ;;  %1589 = vadd.xlane.f32.xlu0 %v1588_v63 }
 0x592   : > { %v1582_v5 = vsel %vm1557_vm14, %v3250_v2, 0.0 }
 0x595   : > { %v3254_v6 = vpop.eup %2817  ;;  %1583 = vadd.xlane.f32.xlu0 %v1582_v5 }
 0x596   : > { %v3256_v8 = vpop.eup %2819  ;;  %v1585_v10 = vsel %vm1557_vm14, %v3254_v6, 0.0 }
 0x597   : > { %1586 = vadd.xlane.f32.xlu1 %v1585_v10  ;;  %v1591_v11 = vsel %vm1557_vm14, %v3256_v8, 0.0 }
 0x599   : > { %1592 = vadd.xlane.f32.xlu0 %v1591_v11 }
 0x5b6   : > { %v3265_v13 = vpop.f32.mrf.mxu1 }
 0x5b8   : > { %v3267_v16 = vpop.f32.mrf.mxu1 }
 0x5ba   : > { %v3269_v17 = vpop.f32.mrf.mxu1 }
 0x5bc   : > { %v3271_v18 = vpop.f32.mrf.mxu1 }
 0x5be   : > { %v2711_v23 = vpop.f32.mrf.mxu1 }
 0x5bf   : > { %v1818_v24 = vadd.f32 %v2711_v23, %v1767_v20 }
 0x5c0   : > { %v1809_v28 = vpop.f32.mrf.mxu1 }
 0x5c1   : > { %v1810_v29 = vadd.f32 %v1809_v28, %v1765_v25  ;;  %v1833_v32 = vadd.f32 %v2549_v26, %v1818_v24  ;;  %v2859_v28 = vmov 0  }
 0x5c2   : > { %v2712_v31 = vpop.f32.mrf.mxu1  ;;  %2768 = vset.pattern.permute.xlu1 %v2859_v28  ;;  %2769 = vset.pattern.permute.xlu0 %v2859_v28 }
 0x5c3   : > { %v1821_v33 = vadd.f32 %v2712_v31, %v1768_v30  ;;  %v1831_v35 = vadd.f32 %v2549_v26, %v1810_v29  ;;  %v1837_v40 = vmax.f32 %v1833_v32, 0.0  ;;  %v2559_v29 = vld [vmem:[%s3430_s23] ss:$0 sm:$0xff] }
 0x5c4   : > { %v1812_v57 = vpop.f32.mrf.mxu1 }
 0x5c5   : > { %v1834_v36 = vadd.f32 %v2549_v26, %v1821_v33  ;;  %v1813_v37 = vadd.f32 %v1812_v57, %v1766_v34  ;;  %v1835_v22 = vmax.f32 %v1831_v35, 0.0  ;;  %v3304_v35 = vpop.permute.xlu1 %2286 }
 0x5c7   : > { %v1838_v39 = vmax.f32 %v1834_v36, 0.0  ;;  %v1832_v47 = vadd.f32 %v2549_v26, %v1813_v37  ;;  %v2536_v36 = vld [vmem:[#allocation2] ss:$0 sm:$0xff] }
 0x5c8   : > { %v1454_v58 = vadd.f32 %v3269_v17, %v2536_v36 }
 0x5c9   : > { %v1840_v53 = vpack.c.bf16 %v1838_v39, %v1837_v40  ;;  %v1836_v54 = vmax.f32 %v1832_v47, 0.0  ;;  %v1443_v40 = vadd.f32 %v2536_v36, %v3267_v16  ;;  %v3309_v39 = vpop.permute.xlu0 %2298 }
 0x5ca   : > { %vm1484_vm2 = vcmp.ge.f32.partialorder %v1454_v58, 0.0 }
 0x5cb   : > { %v1839_v55 = vpack.c.bf16 %v1836_v54, %v1835_v22  ;;  %v1457_v54 = vand.u32 2147483647, %v1443_v40  ;;  %vm1481_vm15 = vcmp.ge.f32.partialorder %v1443_v40, 0.0 }
 0x5cd   : > { %2729 = vmatprep.mubr.bf16.mxu0 %v1839_v55  ;;  %v1461_v56 = vsub.f32 0.0, %v1457_v54 }
 0x5ce   : > { %2730 = vmatmul.mubr.bf16.vlgmr.msra.gmra.mxu0 %v1840_v53  ;;  %v1451_v53 = vadd.f32 %v3265_v13, %v2536_v36 }
 0x5d0   : > { %v1459_v4 = vand.u32 2147483647, %v1451_v53 }
 0x5d2   : > { %v1463_v16 = vsub.f32 0.0, %v1459_v4 }
 0x61a   : > { %v1590_v55 = vpop.xlane.xlu0 %1589 }
 0x620   : > { %v1587_v22 = vpop.xlane.xlu1 %1586 }
 0x621   : > { %2821 = vrcp.f32 %v1587_v22 }
 0x68e   : > { %v2731_v21 = vpop.f32.mrf.mxu0 }
 0x68f   : > { %v1955_v10 = vadd.f32 %v2731_v21, %v2550_v60  ;;  %v1465_v21 = vmul.f32 1.442695, %v1461_v56 }
 0x690   : > { %v1946_v59 = vpop.f32.mrf.mxu0 }
 0x691   : > { %v1947_v63 = vadd.f32 %v2550_v60, %v1946_v59  ;;  %v1963_v24 = vmax.f32 %v1955_v10, 0.0  ;;  %v1460_v59 = vand.u32 2147483647, %v1454_v58 }
 0x692   : > { %v2732_v61 = vpop.f32.mrf.mxu0 }
 0x693   : > { %v1958_v5 = vadd.f32 %v2732_v61, %v2550_v60  ;;  %v1961_v20 = vmax.f32 %v1947_v63, 0.0  ;;  %v1469_v61 = vmul.f32 1.442695, %v1463_v16  ;;  %v1464_v63 = vsub.f32 0.0, %v1460_v59 }
 0x694   : > { %v1949_v11 = vpop.f32.mrf.mxu0 }
 0x695   : > { %v1950_v12 = vadd.f32 %v2550_v60, %v1949_v11  ;;  %v1964_v19 = vmax.f32 %v1958_v5, 0.0  ;;  %v1584_v60 = vpop.xlane.xlu0 %1583  ;;  %v2822_v5 = vpop.eup %2821  ;;  %v1471_v13 = vmul.f32 1.442695, %v1464_v63 }
 0x696   : > { %2823 = vrcp.f32 %v1584_v60  ;;  %v1599_v10 = vmul.f32 %v2822_v5, %v3254_v6 }
 0x697   : > { %v1962_v23 = vmax.f32 %v1950_v12, 0.0  ;;  %v1966_v26 = vpack.c.bf16 %v1964_v19, %v1963_v24  ;;  %2825 = vpow2.f32 %v1465_v21 }
 0x698   : > { %2827 = vpow2.f32 %v1469_v61  ;;  %v1721_v11 = vmul.f32 %v3136_v42, %v1599_v10 }
 0x699   : > { %v1965_v25 = vpack.c.bf16 %v1962_v23, %v1961_v20  ;;  %2829 = vpow2.f32 %v1471_v13  ;;  %v2081_v13 = vsub.f32 1.0, %v3143_v46 }
 0x69a   : > { %v1727_v17 = vsel %vm1557_vm14, %v1721_v11, 0.0  ;;  %v2846_v11 = vld [vmem:[%s3036_s7 + $0x8] sm:$0xff]  }
 0x69b   : > { %2741 = vmatprep.mubr.msk.bf16.mxu1 %vm801_vm0, %v1965_v25 }
 0x69c   : > { %2742 = vmatmul.mubr.msk.bf16.vlgmr.msra.gmra.mxu1 %vm801_vm0, %v1966_v26  ;;  %vm1483_vm0 = vcmp.ge.f32.partialorder %v1451_v53, 0.0 }
 0x6a3   : > { %v2824_v12 = vpop.eup %2823 }
 0x6a4   : > { %v2826_v19 = vpop.eup %2825  ;;  %v1598_v20 = vmul.f32 %v2824_v12, %v3250_v2  ;;  %v946_v12 = vunpack.c.h.bf16 %v2846_v11 }
 0x6a5   : > { %v1473_v23 = vadd.f32 1.0, %v2826_v19  ;;  %v2828_v24 = vpop.eup %2827 }
 0x6a6   : > { %v1720_v25 = vmul.f32 %v3128_v27, %v1598_v20  ;;  %v1475_v26 = vadd.f32 1.0, %v2828_v24  ;;  %v2830_v28 = vpop.eup %2829  ;;  %vm2275_vm6 = vcmp.eq.f32.partialorder %v946_v12, 1.0 }
 0x6a7   : > { %2831 = vrcp.f32 %v1473_v23  ;;  %v1476_v6 = vadd.f32 1.0, %v2830_v28 }
 0x6a8   : > { %2833 = vrcp.f32 %v1475_v26 }
 0x6a9   : > { %2835 = vrcp.f32 %v1476_v6 }
 0x6aa   : > { %2837 = vrcp.f32 %v1590_v55 }
 0x6b4   : > { %v2832_v42 = vpop.eup %2831 }
 0x75c   : > { %v2743_v30 = vpop.f32.mrf.mxu1 }
 0x75d   : > { %v2055_v31 = vadd.f32 %v2743_v30, %v2559_v29  ;;  %v1485_v30 = vmul.f32 %v2832_v42, %v2826_v19 }
 0x75e   : > { %v2046_v32 = vpop.f32.mrf.mxu1 }
 0x75f   : > { %2089 = vrot.lane.b32.xlu0 %v2055_v31, %s3461_s0  ;;  %2069 = vrot.lane.b32.xlu1 %v2055_v31, %s3462_s2  ;;  %v2047_v33 = vadd.f32 %v2559_v29, %v2046_v32  ;;  %v2834_v31 = vpop.eup %2833  ;;  %v1446_v32 = vadd.f32 %v2536_v36, %v3271_v18  ;;  %v1489_v2 = vsel %vm1481_vm15, %v2832_v42, %v1485_v30  ;;  %v2845_v36 = vld [vmem:[%s3036_s7] sm:$0xff]   ;;  %s2498_s7 = sshll.u32 %s2999_s30, 2 }
 0x760   : > { %v2744_v34 = vpop.f32.mrf.mxu1  ;;  %v2836_v27 = vpop.eup %2835  ;;  %v944_v40 = vunpack.c.h.bf16 %v2845_v36  ;;  %p760_p4 = scmp.lt.s32.totalorder %s2498_s7, 7 }
 0x761   : > { %v2058_v57 = vadd.f32 %v2744_v34, %v2559_v29  ;;  %v1458_v34 = vand.u32 2147483647, %v1446_v32  ;;  %v1488_v22 = vmul.f32 %v2836_v27, %v2830_v28  ;;  %vm1482_vm5 = vcmp.ge.f32.partialorder %v1446_v32, 0.0 }
 0x762   : > { %v2049_v37 = vpop.f32.mrf.mxu1  ;;  %vm2273_vm4 = vcmp.eq.f32.partialorder %v944_v40, 1.0  ;;  %v2082_v30 = vsub.f32 1.0, %v944_v40  ;;  %s3464_s7 = smov (!%p760_p4, %s2498_s7), 7 }
 0x763   : > { %2085 = vrot.lane.b32.xlu0 %v2047_v33, %s3461_s0  ;;  %2065 = vrot.lane.b32.xlu1 %v2047_v33, %s3462_s2  ;;  %v2050_v47 = vadd.f32 %v2559_v29, %v2049_v37  ;;  %v1724_v29 = vsel %vm1557_vm14, %v1720_v25, 0.0  ;;  %v1487_v33 = vmul.f32 %v2834_v31, %v2828_v24  ;;  %v1462_v54 = vsub.f32 0.0, %v1458_v34 }
 0x764   : > { %v1492_v4 = vsel %vm1484_vm2, %v2836_v27, %v1488_v22  ;;  %v2305_v53 = vsel %vm2273_vm4, %v3244_v44, %v3242_v41  ;;  %v2083_v44 = vsub.f32 1.0, %v3139_v43  ;;  %v2084_v24 = vsub.f32 1.0, %v946_v12 }
 0x765   : > { %v1491_v37 = vsel %vm1483_vm0, %v2834_v31, %v1487_v33  ;;  %v1467_v18 = vmul.f32 1.442695, %v1462_v54 }
 0x767   : > { %2091 = vrot.lane.b32.xlu0 %v2058_v57, %s3461_s0  ;;  %2071 = vrot.lane.b32.xlu1 %v2058_v57, %s3462_s2  ;;  %v1593_v57 = vpop.xlane.xlu0 %1592 }
 0x768   : > { %2839 = vrcp.f32 %v1593_v57 }
 0x769   : > { %2841 = vpow2.f32 %v1467_v18 }
 0x76b   : > { %2067 = vrot.lane.b32.xlu1 %v2050_v47, %s3462_s2 }
 0x786   : > { %1728 = vadd.xlane.f32.xlu0 %v1727_v17 }
 0x78f   : > { %1725 = vadd.xlane.f32.xlu1 %v1724_v29 }
 0x79c   : > { %2087 = vrot.lane.b32.xlu0 %v2050_v47, %s3461_s0  ;;  %v2838_v47 = vpop.eup %2837  ;;  %s2499_s0 = sshll.u32 %s3464_s7, 3 }
 0x79d   : > { %v1600_v55 = vmul.f32 %v2838_v47, %v3246_v62  ;;  %v2840_v56 = vpop.eup %2839  ;;  %s763_s4 = scalar_lea.vmem %s3432_s25, %s2499_s0 }
 0x79e   : > { %v1601_v16 = vmul.f32 %v2840_v56, %v3256_v8  ;;  %v2842_v21 = vpop.eup %2841 }
 0x79f   : > { %v1722_v58 = vmul.f32 %v3124_v14, %v1600_v55 }
 0x7a0   : > { %2311 = vperm.xlu1 %2768, %v1489_v2   ;;  %v1723_v60 = vmul.f32 %v3133_v38, %v1601_v16 }
 0x7a1   : > { %v1730_v59 = vsel %vm1557_vm14, %v1722_v58, 0.0 }
 0x7a2   : > { %v1733_v61 = vsel %vm1557_vm14, %v1723_v60, 0.0 }
 0x7a4   : > { %2321 = vperm.xlu1 %2768, %v1491_v37  }
 0x7a8   : > { %2326 = vperm.xlu1 %2768, %v1492_v4  }
 0x7ac   : > { %2770 = vset.pattern.permute.xlu1 %v2856_v15 }
 0x7ad   : > { %2374 = vperm.xlu1 %2770, %v3148_v52   ;;  %v1474_v52 = vadd.f32 1.0, %v2842_v21 }
 0x7af   : > { %2843 = vrcp.f32 %v1474_v52 }
 0x7b1   : > { %2379 = vperm.xlu1 %2770, %v2305_v53  }
 0x7bb   : > { %1731 = vadd.xlane.f32.xlu0 %v1730_v59 }
 0x7bc   : > { %v2844_v41 = vpop.eup %2843 }
 0x7bd   : > { %v1486_v62 = vmul.f32 %v2844_v41, %v2842_v21 }
 0x7bf   : > { %1734 = vadd.xlane.f32.xlu0 %v1733_v61  ;;  %v1490_v10 = vsel %vm1482_vm5, %v2844_v41, %v1486_v62 }
 0x7d1   : > { %v2090_v63 = vpop.permute.xlu0 %2089  ;;  %v2070_v14 = vpop.permute.xlu1 %2069 }
 0x7d2   : > { %v2099_v5 = vmul.f32 %v2090_v63, %v2083_v44  ;;  %v2079_v8 = vmul.f32 %v2070_v14, %v3139_v43  ;;  %v2401_v14 = vsel %vm2400_vm3, %v3066_v0, 0.0 }
 0x7d4   : > { %v2103_v38 = vadd.f32 %v2099_v5, %v2079_v8 }
 0x7d5   : > { %v2086_v19 = vpop.permute.xlu0 %2085  ;;  %v2066_v17 = vpop.permute.xlu1 %2065  ;;  %2316 = vperm.xlu0 %2769, %v1490_v10  }
 0x7d6   : > { %v2097_v20 = vmul.f32 %v2086_v19, %v2081_v13  ;;  %v2077_v23 = vmul.f32 %v2066_v17, %v3143_v46  ;;  %2355 = vperm.xlu1 %2770, %v2103_v38   ;;  %v2403_v13 = vsel %vm2400_vm3, %v3087_v9, 0.0 }
 0x7d8   : > { %v2101_v25 = vadd.f32 %v2097_v20, %v2077_v23 }
 0x7d9   : > { %v2092_v26 = vpop.permute.xlu0 %2091  ;;  %v2072_v28 = vpop.permute.xlu1 %2071  ;;  %2771 = vset.pattern.permute.xlu0 %v2856_v15  ;;  %v2307_v15 = vsel %vm2275_vm6, %v3304_v35, %v3309_v39 }
 0x7da   : > { %v2100_v43 = vmul.f32 %v2092_v26, %v2084_v24  ;;  %v2080_v29 = vmul.f32 %v2072_v28, %v946_v12  ;;  %2384 = vperm.xlu0 %2771, %v3145_v48   ;;  %2345 = vperm.xlu1 %2770, %v2101_v25  }
 0x7dc   : > { %v2104_v6 = vadd.f32 %v2100_v43, %v2080_v29  ;;  %v2402_v43 = vsel %vm2400_vm3, %v3073_v3, 0.0 }
 0x7dd   : > { %v2068_v31 = vpop.permute.xlu1 %2067 }
 0x7de   : > { %2360 = vperm.xlu1 %2770, %v2104_v6   ;;  %v2078_v2 = vmul.f32 %v2068_v31, %v944_v40 }
 0x80f   : > { %v1729_v42 = vpop.xlane.xlu0 %1728 }
 0x810   : > { %v2335_v12 = vsel %vm2333_vm8, %v1729_v42, 0.0 }
 0x813   : > { %v2088_v32 = vpop.permute.xlu0 %2087 }
 0x814   : > { %v2098_v46 = vmul.f32 %v2088_v32, %v2082_v30 }
 0x816   : > { %v2102_v33 = vadd.f32 %v2098_v46, %v2078_v2 }
 0x818   : > { %v1726_v27 = vpop.xlane.xlu1 %1725  ;;  %2350 = vperm.xlu1 %2770, %v2102_v33  }
 0x819   : > { %v2334_v53 = vsel %vm2333_vm8, %v1726_v27, 0.0 }
 0x81c   : > { %2389 = vperm.xlu1 %2770, %v2307_v15   ;;  %v2312_v34 = vpop.permute.xlu1 %2311 }
 0x81d   : > { %v2329_v47 = vsel %vm2308_vm7, %v2312_v34, 0.0 }
 0x81e   : > { %v2338_v56 = vadd.f32 %v2334_v53, %v2329_v47 }
 0x820   : > { %v2322_v57 = vpop.permute.xlu1 %2321 }
 0x821   : > { %v2331_v21 = vsel %vm2308_vm7, %v2322_v57, 0.0 }
 0x824   : > { %v2327_v48 = vpop.permute.xlu1 %2326 }
 0x825   : > { %v2332_v37 = vsel %vm2308_vm7, %v2327_v48, 0.0 }
 0x828   : > { %v2375_v54 = vpop.permute.xlu1 %2374 }
 0x829   : > { %v2392_v41 = vsel %vm2371_vm10, %v2375_v54, 0.0 }
 0x82c   : > { %v2380_v40 = vpop.permute.xlu1 %2379 }
 0x82d   : > { %v2393_v23 = vsel %vm2371_vm10, %v2380_v40, 0.0 }
 0x844   : > { %v1732_v22 = vpop.xlane.xlu0 %1731 }
 0x845   : > { %v2336_v55 = vsel %vm2333_vm8, %v1732_v22, 0.0 }
 0x846   : > { %v2340_v52 = vadd.f32 %v2336_v55, %v2331_v21 }
 0x848   : > { %v1735_v4 = vpop.xlane.xlu0 %1734 }
 0x849   : > { %v2337_v18 = vsel %vm2333_vm8, %v1735_v4, 0.0 }
 0x84a   : > { %v2341_v36 = vadd.f32 %v2337_v18, %v2332_v37 }
 0x850   : > { %v2317_v35 = vpop.permute.xlu0 %2316 }
 0x851   : > { %v2356_v39 = vpop.permute.xlu1 %2355  ;;  %v2330_v11 = vsel %vm2308_vm7, %v2317_v35, 0.0 }
 0x852   : > { %v2365_v59 = vsel %vm2342_vm9, %v2356_v39, 0.0  ;;  %v2339_v19 = vadd.f32 %v2335_v12, %v2330_v11 }
 0x853   : > { %v2369_v62 = vadd.f32 %v2365_v59, %v2340_v52 }
 0x855   : > { %v2385_v58 = vpop.permute.xlu0 %2384  ;;  %v2346_v16 = vpop.permute.xlu1 %2345 }
 0x856   : > { %v2363_v60 = vsel %vm2342_vm9, %v2346_v16, 0.0  ;;  %v2394_v44 = vsel %vm2371_vm10, %v2385_v58, 0.0 }
 0x857   : > { %v2367_v61 = vadd.f32 %v2363_v60, %v2338_v56  ;;  %v2398_v5 = vadd.f32 %v2394_v44, %v2369_v62 }
 0x859   : > { %v2396_v63 = vadd.f32 %v2392_v41, %v2367_v61  ;;  %v2407_v38 = vadd.f32 %v2403_v13, %v2398_v5  ;;  %v2361_v10 = vpop.permute.xlu1 %2360 }
 0x85a   : > { %v2366_v17 = vsel %vm2342_vm9, %v2361_v10, 0.0 }
 0x85b   : > { %v2405_v8 = vadd.f32 %v2401_v14, %v2396_v63  ;;  %v2370_v24 = vadd.f32 %v2366_v17, %v2341_v36 }
 0x85d   : > { %2413 = vrot.lane.b32.xlu1 %v2405_v8, %s3462_s2 }
 0x861   : > { %2417 = vrot.lane.b32.xlu1 %v2407_v38, %s3462_s2 }
 0x893   : > { %v2351_v0 = vpop.permute.xlu1 %2350 }
 0x894   : > { %v2364_v20 = vsel %vm2342_vm9, %v2351_v0, 0.0 }
 0x895   : > { %v2368_v9 = vadd.f32 %v2364_v20, %v2339_v19 }
 0x897   : > { %v2397_v25 = vadd.f32 %v2393_v23, %v2368_v9  ;;  %v2390_v26 = vpop.permute.xlu1 %2389 }
 0x898   : > { %v2395_v28 = vsel %vm2371_vm10, %v2390_v26, 0.0 }
 0x899   : > { %v2399_v29 = vadd.f32 %v2395_v28, %v2370_v24  ;;  %v2406_v6 = vadd.f32 %v2402_v43, %v2397_v25 }
 0x89b   : > { %v2408_v42 = vadd.f32 %v3085_v7, %v2399_v29  ;;  %2415 = vrot.lane.b32.xlu0 %v2406_v6, %s3462_s2 }
 0x89f   : > { %2419 = vrot.lane.b32.xlu0 %v2408_v42, %s3462_s2 }
 0x8cf   : > { %v2414_v30 = vpop.permute.xlu1 %2413 }
 0x8d0   : > { %v2425_v1 = vsel %vm874_vm1, %v3177_v49, %v2414_v30 }
 0x8d1   : > { %2430 = vst.msk [vmem:[%s763_s4] sm:$0xff] %vm2429_vm11, %v2425_v1 }
 0x8d3   : > { %v2418_v3 = vpop.permute.xlu1 %2417 }
 0x8d4   : > { %v2427_v32 = vsel %vm874_vm1, %v3181_v51, %v2418_v3 }
 0x8d5   : > { %2432 = vst.msk [vmem:[%s763_s4 + $0x10] sm:$0xff] %vm2429_vm11, %v2427_v32 }
 0x90d   : > { %v2416_v7 = vpop.permute.xlu0 %2415 }
 0x90e   : > { %v2426_v31 = vsel %vm874_vm1, %v3179_v50, %v2416_v7 }
 0x90f   : > { %2431 = vst.msk [vmem:[%s763_s4 + $0x8] sm:$0xff] %vm2429_vm11, %v2426_v31 }
 0x911   : > { %v2420_v2 = vpop.permute.xlu0 %2419 }
 0x912   : > { %v2428_v46 = vsel %vm874_vm1, %v3175_v45, %v2420_v2 }
 0x913   : > { %2433 = vst.msk [vmem:[%s763_s4 + $0x18] sm:$0xff] %vm2429_vm11, %v2428_v46 }
 0x914 PF: > { %s37_s6 = sadd.s32 1, %s2853_s6  }
 0x915   : > { %p34_p5 = scmp.ge.s32.totalorder %s37_s6, 4  }
 0x917   :  { %36 = sbr.rel (!%p34_p5) target bundleno = 11 (0xb), region = 151 }

</bundles_post_ra>
